<compile_context>
chip_gen: v7x
topology: tpu7x:2x2x1
jax: 0.10.0
libtpu: 0.0.40
codegen_flags: <defaults>
</compile_context>

<pallas_src>
import functools
import math

import numpy as np

import jax
import jax.numpy as jnp
from jax.experimental import pallas as pl
from jax.experimental.pallas import tpu as pltpu  # noqa: F401  (TPU backend)


# ----------------------------------------------------------------------------
# The single fused kernel: full forward pass, all intermediates VMEM-resident.
# ----------------------------------------------------------------------------
def _forward_kernel(
    # data
    box_a_ref,        # (BTN, 4)    per-box coords
    box_b_ref,        # (BT, N*4)   per-frame flattened coords
    cat_ref,          # (BTN, 1)    int32 categories in {0,1,2}
    # constant selectors (0/1 matrices)
    pfold_ref,        # (BTN, BT)   broadcast frame value to its N boxes
    pagg_ref,         # (N*BTP, BTN) stacked row-selectors: boxes -> frame
    ptmp_ref,         # (T*BP, BTP)  stacked row-selectors: frames -> video
    # folded weights (BN scale already multiplied in)
    wsum_ref,         # (4, Dh)     sum_j W_i1[4j:4j+4]
    w1_ref,           # (N*4, Dh)   W_i1
    w2_ref,           # (Dh, D)     W_i2
    wf1_ref,          # (D, D)      W_f rows [:D]
    ef_ref,           # (3, D)      embed @ W_f rows [D:]
    wa1_ref,          # (N*D, D)
    wa2_ref,          # (D, D)
    wt1_ref,          # (T*D, D)
    wt2_ref,          # (D, D)
    wc1_ref,          # (D, D)
    wc2_ref,          # (D, H)
    wc3_ref,          # (H, A)
    # packed shifts / biases
    shifts_ref,       # (8, D) rows: [sh_i1(:Dh), sh_i2, sh_f, sh_a1, sh_a2, sh_t1, sh_t2, b_c1]
    bc2_ref,          # (1, H)
    bc3_ref,          # (1, A)
    # outputs
    cls_ref,          # (B, A)
    vfe_ref,          # (B, D)
    *, B, T, N, D, Dh, BTP, BP,
):
    f32 = jnp.float32
    dot = lambda a, b: jnp.dot(a, b, preferred_element_type=f32)
    BT = B * T
    BTN = BT * N

    # --- interaction layer 1 (pairwise diff folded algebraically) -----------
    #   sum_j (box_i - box_j) @ W1_j == box_i @ (sum_j W1_j) - (frame_boxes @ W1)
    z = dot(box_b_ref[...], w1_ref[...])                       # (BT, Dh)
    zb = dot(pfold_ref[...], z)                                # (BTN, Dh) broadcast per box
    h = dot(box_a_ref[...], wsum_ref[...]) - zb
    h = jnp.maximum(h + shifts_ref[0:1, 0:Dh], 0.0)            # (BTN, Dh)

    # --- interaction layer 2 -------------------------------------------------
    h = jnp.maximum(dot(h, w2_ref[...]) + shifts_ref[1:2, :], 0.0)        # (BTN, D)

    # --- fuse layer: concat([h, embed[cat]]) @ W_f == h@Wf1 + onehot@ (embed@Wf2)
    onehot = (cat_ref[...] ==
              jax.lax.broadcasted_iota(jnp.int32, (BTN, 3), 1)).astype(f32)
    f = dot(h, wf1_ref[...]) + dot(onehot, ef_ref[...])
    f = jnp.maximum(f + shifts_ref[2:3, :], 0.0)                          # (BTN, D)

    # --- frame aggregation: (BT, N*D) reshape folded into N accum matmuls ----
    a = jnp.zeros((BTP, D), f32)
    for n in range(N):
        sel = pagg_ref[n * BTP:(n + 1) * BTP, :]               # (BTP, BTN)
        a = a + dot(dot(sel, f), wa1_ref[n * D:(n + 1) * D, :])
    a = jnp.maximum(a + shifts_ref[3:4, :], 0.0)
    a = jnp.maximum(dot(a, wa2_ref[...]) + shifts_ref[4:5, :], 0.0)       # (BTP, D)

    # --- temporal aggregation: (B, T*D) reshape folded into T accum matmuls --
    v = jnp.zeros((BP, D), f32)
    for t in range(T):
        sel = ptmp_ref[t * BP:(t + 1) * BP, :]                 # (BP, BTP)
        v = v + dot(dot(sel, a), wt1_ref[t * D:(t + 1) * D, :])
    v = jnp.maximum(v + shifts_ref[5:6, :], 0.0)
    video = jnp.maximum(dot(v, wt2_ref[...]) + shifts_ref[6:7, :], 0.0)   # (BP, D)

    # --- classifier (rows >= B are harmless padding, dropped at the store) ---
    c = jnp.maximum(dot(video, wc1_ref[...]) + shifts_ref[7:8, :], 0.0)
    c = jnp.maximum(dot(c, wc2_ref[...]) + bc2_ref[...], 0.0)
    cls = dot(c, wc3_ref[...]) + bc3_ref[...]

    cls_ref[...] = cls[0:B, :]
    vfe_ref[...] = video[0:B, :]


# ----------------------------------------------------------------------------
# Wrapper: fold BN, build constant selectors, launch the single pallas_call.
# ----------------------------------------------------------------------------
def forward(params, box_categories, box_input):
    p = params
    B, T, N, _ = box_input.shape
    Dh = p["w_i1"].shape[1]          # coord_feature_dim // 2
    D = p["w_i2"].shape[1]           # coord_feature_dim
    H = p["w_c2"].shape[1]           # classifier hidden (512)
    A = p["w_c3"].shape[1]           # num_classes
    BT, BTN = B * T, B * T * N
    BTP = -(-BT // 8) * 8            # sublane-padded frame-row count
    BP = -(-B // 8) * 8              # sublane-padded batch-row count
    assert D % 8 == 0 and 2 * Dh == D

    # ---- fold eval-mode BN scale into the weights (exact) -------------------
    def fold(w, bn):
        s, sh = bn
        return w * s[None, :], sh

    w1f, sh_i1 = fold(p["w_i1"], p["bn_i1"])                  # (N*4, Dh)
    wsum = jnp.sum(w1f.reshape(N, 4, Dh), axis=0)             # (4, Dh)
    w2f, sh_i2 = fold(p["w_i2"], p["bn_i2"])
    wff, sh_f = fold(p["w_f"], p["bn_f"])
    wf1 = wff[:D, :]                                          # acts on interaction part
    ef = jnp.dot(p["embed"], wff[D:, :])                      # (3, D) acts on one-hot(cat)
    wa1f, sh_a1 = fold(p["w_a1"], p["bn_a1"])
    wa2f, sh_a2 = fold(p["w_a2"], p["bn_a2"])
    wt1f, sh_t1 = fold(p["w_t1"], p["bn_t1"])
    wt2f, sh_t2 = fold(p["w_t2"], p["bn_t2"])

    # ---- pack the <=D-wide shift vectors into a single (8, D) operand -------
    shifts = jnp.zeros((8, D), jnp.float32)
    shifts = shifts.at[0, :Dh].set(sh_i1)
    for i, sh in enumerate([sh_i2, sh_f, sh_a1, sh_a2, sh_t1, sh_t2, p["b_c1"]],
                           start=1):
        shifts = shifts.at[i].set(sh)

    # ---- data views (free row-major reshapes of the same HBM buffer) --------
    box_a = box_input.reshape(BTN, 4).astype(jnp.float32)
    box_b = box_input.reshape(BT, N * 4).astype(jnp.float32)
    cat2d = box_categories.reshape(BTN, 1).astype(jnp.int32)

    # ---- constant 0/1 selector matrices (baked in at trace time) ------------
    pfold = jnp.asarray(np.repeat(np.eye(BT, dtype=np.float32), N, axis=0))  # (BTN, BT)
    pagg_np = np.zeros((N * BTP, BTN), np.float32)
    for n in range(N):
        for r in range(BT):
            pagg_np[n * BTP + r, r * N + n] = 1.0
    pagg = jnp.asarray(pagg_np)
    ptmp_np = np.zeros((T * BP, BTP), np.float32)
    for t in range(T):
        for r in range(B):
            ptmp_np[t * BP + r, r * T + t] = 1.0
    ptmp = jnp.asarray(ptmp_np)

    operands = (
        box_a, box_b, cat2d, pfold, pagg, ptmp,
        wsum, w1f, w2f, wf1, ef, wa1f, wa2f, wt1f, wt2f,
        p["w_c1"], p["w_c2"], p["w_c3"],
        shifts, p["b_c2"].reshape(1, H), p["b_c3"].reshape(1, A),
    )

    kernel = functools.partial(_forward_kernel, B=B, T=T, N=N, D=D, Dh=Dh,
                               BTP=BTP, BP=BP)

    # One kernel invocation; every operand/output is a single full-array VMEM
    # block (total footprint << 1 MiB).  For large B*T*N one would instead
    # tile the row axis with a real grid ("parallel") and cap vmem_limit_bytes.
    cls_output, video_fe = pl.pallas_call(
        kernel,
        out_shape=(jax.ShapeDtypeStruct((B, A), jnp.float32),
                   jax.ShapeDtypeStruct((B, D), jnp.float32)),
        grid=(1,),
        in_specs=[pl.BlockSpec(x.shape, lambda i: (0, 0)) for x in operands],
        out_specs=(pl.BlockSpec((B, A), lambda i: (0, 0)),
                   pl.BlockSpec((B, D), lambda i: (0, 0))),
    )(*operands)
    return cls_output, video_fe


# ----------------------------------------------------------------------------
# Deterministic parameter construction (mirrors the nn.Module __init__ shapes).
# Weights are stored (in, out) so the forward uses x @ W.
# ----------------------------------------------------------------------------
def init_params(key, N, T, D, A, H=512):
    ks = iter(jax.random.split(key, 32))
    nk = lambda: next(ks)

    def lin_w(fan_in, fan_out):
        b = 1.0 / math.sqrt(fan_in)
        return jax.random.uniform(nk(), (fan_in, fan_out), jnp.float32, -b, b)

    def lin_b(fan_in, fan_out):
        b = 1.0 / math.sqrt(fan_in)
        return jax.random.uniform(nk(), (fan_out,), jnp.float32, -b, b)

    def bn(dim, eps=1e-5):
        k1, k2, k3, k4 = jax.random.split(nk(), 4)
        gamma = 1.0 + 0.1 * jax.random.normal(k1, (dim,), jnp.float32)
        beta = 0.1 * jax.random.normal(k2, (dim,), jnp.float32)
        mean = 0.1 * jax.random.normal(k3, (dim,), jnp.float32)
        var = 1.0 + 0.1 * jax.random.uniform(k4, (dim,), jnp.float32)
        s = gamma * jax.lax.rsqrt(var + eps)
        return s, beta - mean * s                      # (scale, shift)

    p = {}
    emb = 0.1 * jax.random.normal(nk(), (3, D // 2), jnp.float32)
    p["embed"] = emb.at[0].set(0.0)                    # padding_idx=0
    p["w_i1"], p["bn_i1"] = lin_w(N * 4, D // 2), bn(D // 2)
    p["w_i2"], p["bn_i2"] = lin_w(D // 2, D), bn(D)
    p["w_f"],  p["bn_f"] = lin_w(D + D // 2, D), bn(D)
    p["w_a1"], p["bn_a1"] = lin_w(N * D, D), bn(D)
    p["w_a2"], p["bn_a2"] = lin_w(D, D), bn(D)
    p["w_t1"], p["bn_t1"] = lin_w(T * D, D), bn(D)
    p["w_t2"], p["bn_t2"] = lin_w(D, D), bn(D)
    p["w_c1"], p["b_c1"] = lin_w(D, D), lin_b(D, D)
    p["w_c2"], p["b_c2"] = lin_w(D, H), lin_b(D, H)
    p["w_c3"], p["b_c3"] = lin_w(H, A), lin_b(H, A)
    return p


# ----------------------------------------------------------------------------
# Pure-JAX reference that mirrors the PyTorch forward literally (for checking).
# ----------------------------------------------------------------------------
def reference_forward(params, box_categories, box_input):
    p = params
    B, T, N, _ = box_input.shape
    D = p["w_i2"].shape[1]

    def lin_bn_relu(x, w, bn):
        s, sh = bn
        return jnp.maximum((x @ w) * s + sh, 0.0)

    cat = box_categories.reshape(B * T * N)
    ident = p["embed"][cat]                                    # (BTN, D//2)
    diff = box_input[:, :, :, None, :] - box_input[:, :, None, :, :]
    x = diff.reshape(B * T * N, N * 4)
    x = lin_bn_relu(x, p["w_i1"], p["bn_i1"])
    x = lin_bn_relu(x, p["w_i2"], p["bn_i2"])
    x = jnp.concatenate([x, ident], axis=-1)
    x = lin_bn_relu(x, p["w_f"], p["bn_f"])
    x = x.reshape(B * T, N * D)
    x = lin_bn_relu(x, p["w_a1"], p["bn_a1"])
    x = lin_bn_relu(x, p["w_a2"], p["bn_a2"])
    x = x.reshape(B, T * D)
    x = lin_bn_relu(x, p["w_t1"], p["bn_t1"])
    video_fe = lin_bn_relu(x, p["w_t2"], p["bn_t2"])
    y = jnp.maximum(video_fe @ p["w_c1"] + p["b_c1"], 0.0)
    y = jnp.maximum(y @ p["w_c2"] + p["b_c2"], 0.0)
    cls = y @ p["w_c3"] + p["b_c3"]
    return cls, video_fe


if __name__ == "__main__":
    # small, module-consistent shapes
    B = 2              # batch
    num_frames = 8     # opt.num_frames  -> T = 4
    N = 4              # opt.num_boxes
    D = 32             # opt.coord_feature_dim
    A = 16             # opt.num_classes
    T = num_frames // 2

    root = jax.random.PRNGKey(0)
    k_params, k_box, k_cat = jax.random.split(root, 3)

    params = init_params(k_params, N, T, D, A)
    box_input = jax.random.uniform(k_box, (B, T, N, 4), jnp.float32)
    box_categories = jax.random.randint(k_cat, (B, T, N), 0, 3).astype(jnp.int32)

    cls_output, video_fe = jax.jit(forward)(params, box_categories, box_input)
    jax.block_until_ready((cls_output, video_fe))

    # shape / sanity / numerical checks against the literal reference
    assert cls_output.shape == (B, A), cls_output.shape
    assert video_fe.shape == (B, D), video_fe.shape
    assert jnp.all(jnp.isfinite(cls_output)) and jnp.all(jnp.isfinite(video_fe))

    cls_exp, vfe_exp = jax.jit(reference_forward)(params, box_categories, box_input)
    assert float(jnp.max(jnp.abs(cls_output - cls_exp))) < 5e-2
    assert float(jnp.max(jnp.abs(video_fe - vfe_exp))) < 5e-2

    print("KERNEL_OK")
</pallas_src>

<mosaic_0001>
module attributes {stable_mosaic.version = 11 : i64} {
  func.func @_forward_kernel(%arg0: i32, %arg1: memref<32x4xf32, #tpu.memory_space<vmem>>, %arg2: memref<8x16xf32, #tpu.memory_space<vmem>>, %arg3: memref<32x1xi32, #tpu.memory_space<vmem>>, %arg4: memref<32x8xf32, #tpu.memory_space<vmem>>, %arg5: memref<32x32xf32, #tpu.memory_space<vmem>>, %arg6: memref<32x8xf32, #tpu.memory_space<vmem>>, %arg7: memref<4x16xf32, #tpu.memory_space<vmem>>, %arg8: memref<16x16xf32, #tpu.memory_space<vmem>>, %arg9: memref<16x32xf32, #tpu.memory_space<vmem>>, %arg10: memref<32x32xf32, #tpu.memory_space<vmem>>, %arg11: memref<3x32xf32, #tpu.memory_space<vmem>>, %arg12: memref<128x32xf32, #tpu.memory_space<vmem>>, %arg13: memref<32x32xf32, #tpu.memory_space<vmem>>, %arg14: memref<128x32xf32, #tpu.memory_space<vmem>>, %arg15: memref<32x32xf32, #tpu.memory_space<vmem>>, %arg16: memref<32x32xf32, #tpu.memory_space<vmem>>, %arg17: memref<32x512xf32, #tpu.memory_space<vmem>>, %arg18: memref<512x16xf32, #tpu.memory_space<vmem>>, %arg19: memref<8x32xf32, #tpu.memory_space<vmem>>, %arg20: memref<1x512xf32, #tpu.memory_space<vmem>>, %arg21: memref<1x16xf32, #tpu.memory_space<vmem>>, %arg22: memref<2x16xf32, #tpu.memory_space<vmem>>, %arg23: memref<2x32xf32, #tpu.memory_space<vmem>>) attributes {dimension_semantics = [#tpu.dimension_semantics<arbitrary>], iteration_bounds = array<i64: 1>, scalar_prefetch = 0 : i64, scratch_operands = 0 : i64, tpu.core_type = #tpu.core_type<tc>, window_params = [{pipeline_mode = #tpu.pipeline_mode<synchronous>, transform_indices = @transform_0, window_bounds = array<i64: 32, 4>}, {pipeline_mode = #tpu.pipeline_mode<synchronous>, transform_indices = @transform_1, window_bounds = array<i64: 8, 16>}, {pipeline_mode = #tpu.pipeline_mode<synchronous>, transform_indices = @transform_2, window_bounds = array<i64: 32, 1>}, {pipeline_mode = #tpu.pipeline_mode<synchronous>, transform_indices = @transform_3, window_bounds = array<i64: 32, 8>}, {pipeline_mode = #tpu.pipeline_mode<synchronous>, transform_indices = @transform_4, window_bounds = array<i64: 32, 32>}, {pipeline_mode = #tpu.pipeline_mode<synchronous>, transform_indices = @transform_5, window_bounds = array<i64: 32, 8>}, {pipeline_mode = #tpu.pipeline_mode<synchronous>, transform_indices = @transform_6, window_bounds = array<i64: 4, 16>}, {pipeline_mode = #tpu.pipeline_mode<synchronous>, transform_indices = @transform_7, window_bounds = array<i64: 16, 16>}, {pipeline_mode = #tpu.pipeline_mode<synchronous>, transform_indices = @transform_8, window_bounds = array<i64: 16, 32>}, {pipeline_mode = #tpu.pipeline_mode<synchronous>, transform_indices = @transform_9, window_bounds = array<i64: 32, 32>}, {pipeline_mode = #tpu.pipeline_mode<synchronous>, transform_indices = @transform_10, window_bounds = array<i64: 3, 32>}, {pipeline_mode = #tpu.pipeline_mode<synchronous>, transform_indices = @transform_11, window_bounds = array<i64: 128, 32>}, {pipeline_mode = #tpu.pipeline_mode<synchronous>, transform_indices = @transform_12, window_bounds = array<i64: 32, 32>}, {pipeline_mode = #tpu.pipeline_mode<synchronous>, transform_indices = @transform_13, window_bounds = array<i64: 128, 32>}, {pipeline_mode = #tpu.pipeline_mode<synchronous>, transform_indices = @transform_14, window_bounds = array<i64: 32, 32>}, {pipeline_mode = #tpu.pipeline_mode<synchronous>, transform_indices = @transform_15, window_bounds = array<i64: 32, 32>}, {pipeline_mode = #tpu.pipeline_mode<synchronous>, transform_indices = @transform_16, window_bounds = array<i64: 32, 512>}, {pipeline_mode = #tpu.pipeline_mode<synchronous>, transform_indices = @transform_17, window_bounds = array<i64: 512, 16>}, {pipeline_mode = #tpu.pipeline_mode<synchronous>, transform_indices = @transform_18, window_bounds = array<i64: 8, 32>}, {pipeline_mode = #tpu.pipeline_mode<synchronous>, transform_indices = @transform_19, window_bounds = array<i64: 1, 512>}, {pipeline_mode = #tpu.pipeline_mode<synchronous>, transform_indices = @transform_20, window_bounds = array<i64: 1, 16>}, {pipeline_mode = #tpu.pipeline_mode<synchronous>, transform_indices = @transform_21, window_bounds = array<i64: 2, 16>}, {pipeline_mode = #tpu.pipeline_mode<synchronous>, transform_indices = @transform_22, window_bounds = array<i64: 2, 32>}]} {
    %c0 = arith.constant 0 : index
    %c0_0 = arith.constant 0 : index
    %0 = vector.load %arg2[%c0, %c0_0] : memref<8x16xf32, #tpu.memory_space<vmem>>, vector<8x16xf32>
    %c0_1 = arith.constant 0 : index
    %c0_2 = arith.constant 0 : index
    %1 = vector.load %arg8[%c0_1, %c0_2] : memref<16x16xf32, #tpu.memory_space<vmem>>, vector<16x16xf32>
    %cst = arith.constant dense<0.000000e+00> : vector<8x16xf32>
    %2 = tpu.matmul %0, %1, %cst {dimension_numbers = #tpu.dot_dimension_numbers<[1], [0], [0], [1], [0, 0, 1, 1], [], []>} : vector<8x16xf32>, vector<16x16xf32>, vector<8x16xf32> -> vector<8x16xf32>
    %c0_3 = arith.constant 0 : index
    %c0_4 = arith.constant 0 : index
    %3 = vector.load %arg4[%c0_3, %c0_4] : memref<32x8xf32, #tpu.memory_space<vmem>>, vector<32x8xf32>
    %cst_5 = arith.constant dense<0.000000e+00> : vector<32x16xf32>
    %4 = tpu.matmul %3, %2, %cst_5 {dimension_numbers = #tpu.dot_dimension_numbers<[1], [0], [0], [1], [0, 0, 1, 1], [], []>} : vector<32x8xf32>, vector<8x16xf32>, vector<32x16xf32> -> vector<32x16xf32>
    %c0_6 = arith.constant 0 : index
    %c0_7 = arith.constant 0 : index
    %5 = vector.load %arg1[%c0_6, %c0_7] : memref<32x4xf32, #tpu.memory_space<vmem>>, vector<32x4xf32>
    %c0_8 = arith.constant 0 : index
    %c0_9 = arith.constant 0 : index
    %6 = vector.load %arg7[%c0_8, %c0_9] : memref<4x16xf32, #tpu.memory_space<vmem>>, vector<4x16xf32>
    %cst_10 = arith.constant dense<0.000000e+00> : vector<32x16xf32>
    %7 = tpu.matmul %5, %6, %cst_10 {dimension_numbers = #tpu.dot_dimension_numbers<[1], [0], [0], [1], [0, 0, 1, 1], [], []>} : vector<32x4xf32>, vector<4x16xf32>, vector<32x16xf32> -> vector<32x16xf32>
    %8 = arith.subf %7, %4 : vector<32x16xf32>
    %c0_11 = arith.constant 0 : index
    %c0_12 = arith.constant 0 : index
    %9 = vector.load %arg19[%c0_11, %c0_12] : memref<8x32xf32, #tpu.memory_space<vmem>>, vector<1x16xf32>
    %10 = vector.broadcast %9 : vector<1x16xf32> to vector<32x16xf32>
    %11 = arith.addf %8, %10 : vector<32x16xf32>
    %cst_13 = arith.constant 0.000000e+00 : f32
    %12 = vector.broadcast %cst_13 : f32 to vector<32x16xf32>
    %13 = arith.maximumf %11, %12 : vector<32x16xf32>
    %c0_14 = arith.constant 0 : index
    %c0_15 = arith.constant 0 : index
    %14 = vector.load %arg9[%c0_14, %c0_15] : memref<16x32xf32, #tpu.memory_space<vmem>>, vector<16x32xf32>
    %cst_16 = arith.constant dense<0.000000e+00> : vector<32x32xf32>
    %15 = tpu.matmul %13, %14, %cst_16 {dimension_numbers = #tpu.dot_dimension_numbers<[1], [0], [0], [1], [0, 0, 1, 1], [], []>} : vector<32x16xf32>, vector<16x32xf32>, vector<32x32xf32> -> vector<32x32xf32>
    %c1 = arith.constant 1 : index
    %c0_17 = arith.constant 0 : index
    %16 = vector.load %arg19[%c1, %c0_17] : memref<8x32xf32, #tpu.memory_space<vmem>>, vector<1x32xf32>
    %17 = vector.broadcast %16 : vector<1x32xf32> to vector<32x32xf32>
    %18 = arith.addf %15, %17 : vector<32x32xf32>
    %cst_18 = arith.constant 0.000000e+00 : f32
    %19 = vector.broadcast %cst_18 : f32 to vector<32x32xf32>
    %20 = arith.maximumf %18, %19 : vector<32x32xf32>
    %c0_19 = arith.constant 0 : index
    %c0_20 = arith.constant 0 : index
    %21 = vector.load %arg3[%c0_19, %c0_20] : memref<32x1xi32, #tpu.memory_space<vmem>>, vector<32x1xi32>
    %22 = tpu.iota {dimensions = array<i32: 1>} : vector<32x3xi32>
    %23 = vector.broadcast %21 : vector<32x1xi32> to vector<32x3xi32>
    %24 = arith.cmpi eq, %23, %22 : vector<32x3xi32>
    %25 = arith.extui %24 : vector<32x3xi1> to vector<32x3xi32>
    %26 = arith.sitofp %25 : vector<32x3xi32> to vector<32x3xf32>
    %c0_21 = arith.constant 0 : index
    %c0_22 = arith.constant 0 : index
    %27 = vector.load %arg10[%c0_21, %c0_22] : memref<32x32xf32, #tpu.memory_space<vmem>>, vector<32x32xf32>
    %cst_23 = arith.constant dense<0.000000e+00> : vector<32x32xf32>
    %28 = tpu.matmul %20, %27, %cst_23 {dimension_numbers = #tpu.dot_dimension_numbers<[1], [0], [0], [1], [0, 0, 1, 1], [], []>} : vector<32x32xf32>, vector<32x32xf32>, vector<32x32xf32> -> vector<32x32xf32>
    %c0_24 = arith.constant 0 : index
    %c0_25 = arith.constant 0 : index
    %29 = vector.load %arg11[%c0_24, %c0_25] : memref<3x32xf32, #tpu.memory_space<vmem>>, vector<3x32xf32>
    %cst_26 = arith.constant dense<0.000000e+00> : vector<32x32xf32>
    %30 = tpu.matmul %26, %29, %cst_26 {dimension_numbers = #tpu.dot_dimension_numbers<[1], [0], [0], [1], [0, 0, 1, 1], [], []>} : vector<32x3xf32>, vector<3x32xf32>, vector<32x32xf32> -> vector<32x32xf32>
    %31 = arith.addf %28, %30 : vector<32x32xf32>
    %c2 = arith.constant 2 : index
    %c0_27 = arith.constant 0 : index
    %32 = vector.load %arg19[%c2, %c0_27] : memref<8x32xf32, #tpu.memory_space<vmem>>, vector<1x32xf32>
    %33 = vector.broadcast %32 : vector<1x32xf32> to vector<32x32xf32>
    %34 = arith.addf %31, %33 : vector<32x32xf32>
    %cst_28 = arith.constant 0.000000e+00 : f32
    %35 = vector.broadcast %cst_28 : f32 to vector<32x32xf32>
    %36 = arith.maximumf %34, %35 : vector<32x32xf32>
    %cst_29 = arith.constant 0.000000e+00 : f32
    %37 = vector.broadcast %cst_29 : f32 to vector<8x32xf32>
    %c0_30 = arith.constant 0 : index
    %c0_31 = arith.constant 0 : index
    %38 = vector.load %arg5[%c0_30, %c0_31] : memref<32x32xf32, #tpu.memory_space<vmem>>, vector<8x32xf32>
    %cst_32 = arith.constant dense<0.000000e+00> : vector<8x32xf32>
    %39 = tpu.matmul %38, %36, %cst_32 {dimension_numbers = #tpu.dot_dimension_numbers<[1], [0], [0], [1], [0, 0, 1, 1], [], []>} : vector<8x32xf32>, vector<32x32xf32>, vector<8x32xf32> -> vector<8x32xf32>
    %c0_33 = arith.constant 0 : index
    %c0_34 = arith.constant 0 : index
    %40 = vector.load %arg12[%c0_33, %c0_34] : memref<128x32xf32, #tpu.memory_space<vmem>>, vector<32x32xf32>
    %cst_35 = arith.constant dense<0.000000e+00> : vector<8x32xf32>
    %41 = tpu.matmul %39, %40, %cst_35 {dimension_numbers = #tpu.dot_dimension_numbers<[1], [0], [0], [1], [0, 0, 1, 1], [], []>} : vector<8x32xf32>, vector<32x32xf32>, vector<8x32xf32> -> vector<8x32xf32>
    %42 = arith.addf %37, %41 : vector<8x32xf32>
    %c8 = arith.constant 8 : index
    %c0_36 = arith.constant 0 : index
    %43 = vector.load %arg5[%c8, %c0_36] : memref<32x32xf32, #tpu.memory_space<vmem>>, vector<8x32xf32>
    %cst_37 = arith.constant dense<0.000000e+00> : vector<8x32xf32>
    %44 = tpu.matmul %43, %36, %cst_37 {dimension_numbers = #tpu.dot_dimension_numbers<[1], [0], [0], [1], [0, 0, 1, 1], [], []>} : vector<8x32xf32>, vector<32x32xf32>, vector<8x32xf32> -> vector<8x32xf32>
    %c32 = arith.constant 32 : index
    %c0_38 = arith.constant 0 : index
    %45 = vector.load %arg12[%c32, %c0_38] : memref<128x32xf32, #tpu.memory_space<vmem>>, vector<32x32xf32>
    %cst_39 = arith.constant dense<0.000000e+00> : vector<8x32xf32>
    %46 = tpu.matmul %44, %45, %cst_39 {dimension_numbers = #tpu.dot_dimension_numbers<[1], [0], [0], [1], [0, 0, 1, 1], [], []>} : vector<8x32xf32>, vector<32x32xf32>, vector<8x32xf32> -> vector<8x32xf32>
    %47 = arith.addf %42, %46 : vector<8x32xf32>
    %c16 = arith.constant 16 : index
    %c0_40 = arith.constant 0 : index
    %48 = vector.load %arg5[%c16, %c0_40] : memref<32x32xf32, #tpu.memory_space<vmem>>, vector<8x32xf32>
    %cst_41 = arith.constant dense<0.000000e+00> : vector<8x32xf32>
    %49 = tpu.matmul %48, %36, %cst_41 {dimension_numbers = #tpu.dot_dimension_numbers<[1], [0], [0], [1], [0, 0, 1, 1], [], []>} : vector<8x32xf32>, vector<32x32xf32>, vector<8x32xf32> -> vector<8x32xf32>
    %c64 = arith.constant 64 : index
    %c0_42 = arith.constant 0 : index
    %50 = vector.load %arg12[%c64, %c0_42] : memref<128x32xf32, #tpu.memory_space<vmem>>, vector<32x32xf32>
    %cst_43 = arith.constant dense<0.000000e+00> : vector<8x32xf32>
    %51 = tpu.matmul %49, %50, %cst_43 {dimension_numbers = #tpu.dot_dimension_numbers<[1], [0], [0], [1], [0, 0, 1, 1], [], []>} : vector<8x32xf32>, vector<32x32xf32>, vector<8x32xf32> -> vector<8x32xf32>
    %52 = arith.addf %47, %51 : vector<8x32xf32>
    %c24 = arith.constant 24 : index
    %c0_44 = arith.constant 0 : index
    %53 = vector.load %arg5[%c24, %c0_44] : memref<32x32xf32, #tpu.memory_space<vmem>>, vector<8x32xf32>
    %cst_45 = arith.constant dense<0.000000e+00> : vector<8x32xf32>
    %54 = tpu.matmul %53, %36, %cst_45 {dimension_numbers = #tpu.dot_dimension_numbers<[1], [0], [0], [1], [0, 0, 1, 1], [], []>} : vector<8x32xf32>, vector<32x32xf32>, vector<8x32xf32> -> vector<8x32xf32>
    %c96 = arith.constant 96 : index
    %c0_46 = arith.constant 0 : index
    %55 = vector.load %arg12[%c96, %c0_46] : memref<128x32xf32, #tpu.memory_space<vmem>>, vector<32x32xf32>
    %cst_47 = arith.constant dense<0.000000e+00> : vector<8x32xf32>
    %56 = tpu.matmul %54, %55, %cst_47 {dimension_numbers = #tpu.dot_dimension_numbers<[1], [0], [0], [1], [0, 0, 1, 1], [], []>} : vector<8x32xf32>, vector<32x32xf32>, vector<8x32xf32> -> vector<8x32xf32>
    %57 = arith.addf %52, %56 : vector<8x32xf32>
    %c3 = arith.constant 3 : index
    %c0_48 = arith.constant 0 : index
    %58 = vector.load %arg19[%c3, %c0_48] : memref<8x32xf32, #tpu.memory_space<vmem>>, vector<1x32xf32>
    %59 = vector.broadcast %58 : vector<1x32xf32> to vector<8x32xf32>
    %60 = arith.addf %57, %59 : vector<8x32xf32>
    %cst_49 = arith.constant 0.000000e+00 : f32
    %61 = vector.broadcast %cst_49 : f32 to vector<8x32xf32>
    %62 = arith.maximumf %60, %61 : vector<8x32xf32>
    %c0_50 = arith.constant 0 : index
    %c0_51 = arith.constant 0 : index
    %63 = vector.load %arg13[%c0_50, %c0_51] : memref<32x32xf32, #tpu.memory_space<vmem>>, vector<32x32xf32>
    %cst_52 = arith.constant dense<0.000000e+00> : vector<8x32xf32>
    %64 = tpu.matmul %62, %63, %cst_52 {dimension_numbers = #tpu.dot_dimension_numbers<[1], [0], [0], [1], [0, 0, 1, 1], [], []>} : vector<8x32xf32>, vector<32x32xf32>, vector<8x32xf32> -> vector<8x32xf32>
    %c4 = arith.constant 4 : index
    %c0_53 = arith.constant 0 : index
    %65 = vector.load %arg19[%c4, %c0_53] : memref<8x32xf32, #tpu.memory_space<vmem>>, vector<1x32xf32>
    %66 = vector.broadcast %65 : vector<1x32xf32> to vector<8x32xf32>
    %67 = arith.addf %64, %66 : vector<8x32xf32>
    %cst_54 = arith.constant 0.000000e+00 : f32
    %68 = vector.broadcast %cst_54 : f32 to vector<8x32xf32>
    %69 = arith.maximumf %67, %68 : vector<8x32xf32>
    %cst_55 = arith.constant 0.000000e+00 : f32
    %70 = vector.broadcast %cst_55 : f32 to vector<8x32xf32>
    %c0_56 = arith.constant 0 : index
    %c0_57 = arith.constant 0 : index
    %71 = vector.load %arg6[%c0_56, %c0_57] : memref<32x8xf32, #tpu.memory_space<vmem>>, vector<8x8xf32>
    %cst_58 = arith.constant dense<0.000000e+00> : vector<8x32xf32>
    %72 = tpu.matmul %71, %69, %cst_58 {dimension_numbers = #tpu.dot_dimension_numbers<[1], [0], [0], [1], [0, 0, 1, 1], [], []>} : vector<8x8xf32>, vector<8x32xf32>, vector<8x32xf32> -> vector<8x32xf32>
    %c0_59 = arith.constant 0 : index
    %c0_60 = arith.constant 0 : index
    %73 = vector.load %arg14[%c0_59, %c0_60] : memref<128x32xf32, #tpu.memory_space<vmem>>, vector<32x32xf32>
    %cst_61 = arith.constant dense<0.000000e+00> : vector<8x32xf32>
    %74 = tpu.matmul %72, %73, %cst_61 {dimension_numbers = #tpu.dot_dimension_numbers<[1], [0], [0], [1], [0, 0, 1, 1], [], []>} : vector<8x32xf32>, vector<32x32xf32>, vector<8x32xf32> -> vector<8x32xf32>
    %75 = arith.addf %70, %74 : vector<8x32xf32>
    %c8_62 = arith.constant 8 : index
    %c0_63 = arith.constant 0 : index
    %76 = vector.load %arg6[%c8_62, %c0_63] : memref<32x8xf32, #tpu.memory_space<vmem>>, vector<8x8xf32>
    %cst_64 = arith.constant dense<0.000000e+00> : vector<8x32xf32>
    %77 = tpu.matmul %76, %69, %cst_64 {dimension_numbers = #tpu.dot_dimension_numbers<[1], [0], [0], [1], [0, 0, 1, 1], [], []>} : vector<8x8xf32>, vector<8x32xf32>, vector<8x32xf32> -> vector<8x32xf32>
    %c32_65 = arith.constant 32 : index
    %c0_66 = arith.constant 0 : index
    %78 = vector.load %arg14[%c32_65, %c0_66] : memref<128x32xf32, #tpu.memory_space<vmem>>, vector<32x32xf32>
    %cst_67 = arith.constant dense<0.000000e+00> : vector<8x32xf32>
    %79 = tpu.matmul %77, %78, %cst_67 {dimension_numbers = #tpu.dot_dimension_numbers<[1], [0], [0], [1], [0, 0, 1, 1], [], []>} : vector<8x32xf32>, vector<32x32xf32>, vector<8x32xf32> -> vector<8x32xf32>
    %80 = arith.addf %75, %79 : vector<8x32xf32>
    %c16_68 = arith.constant 16 : index
    %c0_69 = arith.constant 0 : index
    %81 = vector.load %arg6[%c16_68, %c0_69] : memref<32x8xf32, #tpu.memory_space<vmem>>, vector<8x8xf32>
    %cst_70 = arith.constant dense<0.000000e+00> : vector<8x32xf32>
    %82 = tpu.matmul %81, %69, %cst_70 {dimension_numbers = #tpu.dot_dimension_numbers<[1], [0], [0], [1], [0, 0, 1, 1], [], []>} : vector<8x8xf32>, vector<8x32xf32>, vector<8x32xf32> -> vector<8x32xf32>
    %c64_71 = arith.constant 64 : index
    %c0_72 = arith.constant 0 : index
    %83 = vector.load %arg14[%c64_71, %c0_72] : memref<128x32xf32, #tpu.memory_space<vmem>>, vector<32x32xf32>
    %cst_73 = arith.constant dense<0.000000e+00> : vector<8x32xf32>
    %84 = tpu.matmul %82, %83, %cst_73 {dimension_numbers = #tpu.dot_dimension_numbers<[1], [0], [0], [1], [0, 0, 1, 1], [], []>} : vector<8x32xf32>, vector<32x32xf32>, vector<8x32xf32> -> vector<8x32xf32>
    %85 = arith.addf %80, %84 : vector<8x32xf32>
    %c24_74 = arith.constant 24 : index
    %c0_75 = arith.constant 0 : index
    %86 = vector.load %arg6[%c24_74, %c0_75] : memref<32x8xf32, #tpu.memory_space<vmem>>, vector<8x8xf32>
    %cst_76 = arith.constant dense<0.000000e+00> : vector<8x32xf32>
    %87 = tpu.matmul %86, %69, %cst_76 {dimension_numbers = #tpu.dot_dimension_numbers<[1], [0], [0], [1], [0, 0, 1, 1], [], []>} : vector<8x8xf32>, vector<8x32xf32>, vector<8x32xf32> -> vector<8x32xf32>
    %c96_77 = arith.constant 96 : index
    %c0_78 = arith.constant 0 : index
    %88 = vector.load %arg14[%c96_77, %c0_78] : memref<128x32xf32, #tpu.memory_space<vmem>>, vector<32x32xf32>
    %cst_79 = arith.constant dense<0.000000e+00> : vector<8x32xf32>
    %89 = tpu.matmul %87, %88, %cst_79 {dimension_numbers = #tpu.dot_dimension_numbers<[1], [0], [0], [1], [0, 0, 1, 1], [], []>} : vector<8x32xf32>, vector<32x32xf32>, vector<8x32xf32> -> vector<8x32xf32>
    %90 = arith.addf %85, %89 : vector<8x32xf32>
    %c5 = arith.constant 5 : index
    %c0_80 = arith.constant 0 : index
    %91 = vector.load %arg19[%c5, %c0_80] : memref<8x32xf32, #tpu.memory_space<vmem>>, vector<1x32xf32>
    %92 = vector.broadcast %91 : vector<1x32xf32> to vector<8x32xf32>
    %93 = arith.addf %90, %92 : vector<8x32xf32>
    %cst_81 = arith.constant 0.000000e+00 : f32
    %94 = vector.broadcast %cst_81 : f32 to vector<8x32xf32>
    %95 = arith.maximumf %93, %94 : vector<8x32xf32>
    %c0_82 = arith.constant 0 : index
    %c0_83 = arith.constant 0 : index
    %96 = vector.load %arg15[%c0_82, %c0_83] : memref<32x32xf32, #tpu.memory_space<vmem>>, vector<32x32xf32>
    %cst_84 = arith.constant dense<0.000000e+00> : vector<8x32xf32>
    %97 = tpu.matmul %95, %96, %cst_84 {dimension_numbers = #tpu.dot_dimension_numbers<[1], [0], [0], [1], [0, 0, 1, 1], [], []>} : vector<8x32xf32>, vector<32x32xf32>, vector<8x32xf32> -> vector<8x32xf32>
    %c6 = arith.constant 6 : index
    %c0_85 = arith.constant 0 : index
    %98 = vector.load %arg19[%c6, %c0_85] : memref<8x32xf32, #tpu.memory_space<vmem>>, vector<1x32xf32>
    %99 = vector.broadcast %98 : vector<1x32xf32> to vector<8x32xf32>
    %100 = arith.addf %97, %99 : vector<8x32xf32>
    %cst_86 = arith.constant 0.000000e+00 : f32
    %101 = vector.broadcast %cst_86 : f32 to vector<8x32xf32>
    %102 = arith.maximumf %100, %101 : vector<8x32xf32>
    %c0_87 = arith.constant 0 : index
    %c0_88 = arith.constant 0 : index
    %103 = vector.load %arg16[%c0_87, %c0_88] : memref<32x32xf32, #tpu.memory_space<vmem>>, vector<32x32xf32>
    %cst_89 = arith.constant dense<0.000000e+00> : vector<8x32xf32>
    %104 = tpu.matmul %102, %103, %cst_89 {dimension_numbers = #tpu.dot_dimension_numbers<[1], [0], [0], [1], [0, 0, 1, 1], [], []>} : vector<8x32xf32>, vector<32x32xf32>, vector<8x32xf32> -> vector<8x32xf32>
    %c7 = arith.constant 7 : index
    %c0_90 = arith.constant 0 : index
    %105 = vector.load %arg19[%c7, %c0_90] : memref<8x32xf32, #tpu.memory_space<vmem>>, vector<1x32xf32>
    %106 = vector.broadcast %105 : vector<1x32xf32> to vector<8x32xf32>
    %107 = arith.addf %104, %106 : vector<8x32xf32>
    %cst_91 = arith.constant 0.000000e+00 : f32
    %108 = vector.broadcast %cst_91 : f32 to vector<8x32xf32>
    %109 = arith.maximumf %107, %108 : vector<8x32xf32>
    %c0_92 = arith.constant 0 : index
    %c0_93 = arith.constant 0 : index
    %110 = vector.load %arg17[%c0_92, %c0_93] : memref<32x512xf32, #tpu.memory_space<vmem>>, vector<32x512xf32>
    %cst_94 = arith.constant dense<0.000000e+00> : vector<8x512xf32>
    %111 = tpu.matmul %109, %110, %cst_94 {dimension_numbers = #tpu.dot_dimension_numbers<[1], [0], [0], [1], [0, 0, 1, 1], [], []>} : vector<8x32xf32>, vector<32x512xf32>, vector<8x512xf32> -> vector<8x512xf32>
    %c0_95 = arith.constant 0 : index
    %c0_96 = arith.constant 0 : index
    %112 = vector.load %arg20[%c0_95, %c0_96] : memref<1x512xf32, #tpu.memory_space<vmem>>, vector<1x512xf32>
    %113 = vector.broadcast %112 : vector<1x512xf32> to vector<8x512xf32>
    %114 = arith.addf %111, %113 : vector<8x512xf32>
    %cst_97 = arith.constant 0.000000e+00 : f32
    %115 = vector.broadcast %cst_97 : f32 to vector<8x512xf32>
    %116 = arith.maximumf %114, %115 : vector<8x512xf32>
    %c0_98 = arith.constant 0 : index
    %c0_99 = arith.constant 0 : index
    %117 = vector.load %arg18[%c0_98, %c0_99] : memref<512x16xf32, #tpu.memory_space<vmem>>, vector<512x16xf32>
    %cst_100 = arith.constant dense<0.000000e+00> : vector<8x16xf32>
    %118 = tpu.matmul %116, %117, %cst_100 {dimension_numbers = #tpu.dot_dimension_numbers<[1], [0], [0], [1], [0, 0, 1, 1], [], []>} : vector<8x512xf32>, vector<512x16xf32>, vector<8x16xf32> -> vector<8x16xf32>
    %c0_101 = arith.constant 0 : index
    %c0_102 = arith.constant 0 : index
    %119 = vector.load %arg21[%c0_101, %c0_102] : memref<1x16xf32, #tpu.memory_space<vmem>>, vector<1x16xf32>
    %120 = vector.broadcast %119 : vector<1x16xf32> to vector<8x16xf32>
    %121 = arith.addf %118, %120 : vector<8x16xf32>
    %122 = vector.extract_strided_slice %121 {offsets = [0, 0], sizes = [2, 16], strides = [1, 1]} : vector<8x16xf32> to vector<2x16xf32>
    %c0_103 = arith.constant 0 : index
    %c0_104 = arith.constant 0 : index
    %123 = vector.load %arg22[%c0_103, %c0_104] : memref<2x16xf32, #tpu.memory_space<vmem>>, vector<2x16xf32>
    tpu.vector_store %arg22[%c0_103, %c0_104], %122 {strides = array<i32>} : memref<2x16xf32, #tpu.memory_space<vmem>>, vector<2x16xf32>,
    %124 = vector.extract_strided_slice %102 {offsets = [0, 0], sizes = [2, 32], strides = [1, 1]} : vector<8x32xf32> to vector<2x32xf32>
    %c0_105 = arith.constant 0 : index
    %c0_106 = arith.constant 0 : index
    %125 = vector.load %arg23[%c0_105, %c0_106] : memref<2x32xf32, #tpu.memory_space<vmem>>, vector<2x32xf32>
    tpu.vector_store %arg23[%c0_105, %c0_106], %124 {strides = array<i32>} : memref<2x32xf32, #tpu.memory_space<vmem>>, vector<2x32xf32>,
    return
  }
  func.func @transform_0(%arg0: i32) -> (i32, i32) {
    %c0_i32 = arith.constant 0 : i32
    %c0_i32_0 = arith.constant 0 : i32
    %c0_i32_1 = arith.constant 0 : i32
    return %c0_i32, %c0_i32_0 : i32, i32
  }
  func.func @transform_1(%arg0: i32) -> (i32, i32) {
    %c0_i32 = arith.constant 0 : i32
    %c0_i32_0 = arith.constant 0 : i32
    %c0_i32_1 = arith.constant 0 : i32
    return %c0_i32, %c0_i32_0 : i32, i32
  }
  func.func @transform_2(%arg0: i32) -> (i32, i32) {
    %c0_i32 = arith.constant 0 : i32
    %c0_i32_0 = arith.constant 0 : i32
    %c0_i32_1 = arith.constant 0 : i32
    return %c0_i32, %c0_i32_0 : i32, i32
  }
  func.func @transform_3(%arg0: i32) -> (i32, i32) {
    %c0_i32 = arith.constant 0 : i32
    %c0_i32_0 = arith.constant 0 : i32
    %c0_i32_1 = arith.constant 0 : i32
    return %c0_i32, %c0_i32_0 : i32, i32
  }
  func.func @transform_4(%arg0: i32) -> (i32, i32) {
    %c0_i32 = arith.constant 0 : i32
    %c0_i32_0 = arith.constant 0 : i32
    %c0_i32_1 = arith.constant 0 : i32
    return %c0_i32, %c0_i32_0 : i32, i32
  }
  func.func @transform_5(%arg0: i32) -> (i32, i32) {
    %c0_i32 = arith.constant 0 : i32
    %c0_i32_0 = arith.constant 0 : i32
    %c0_i32_1 = arith.constant 0 : i32
    return %c0_i32, %c0_i32_0 : i32, i32
  }
  func.func @transform_6(%arg0: i32) -> (i32, i32) {
    %c0_i32 = arith.constant 0 : i32
    %c0_i32_0 = arith.constant 0 : i32
    %c0_i32_1 = arith.constant 0 : i32
    return %c0_i32, %c0_i32_0 : i32, i32
  }
  func.func @transform_7(%arg0: i32) -> (i32, i32) {
    %c0_i32 = arith.constant 0 : i32
    %c0_i32_0 = arith.constant 0 : i32
    %c0_i32_1 = arith.constant 0 : i32
    return %c0_i32, %c0_i32_0 : i32, i32
  }
  func.func @transform_8(%arg0: i32) -> (i32, i32) {
    %c0_i32 = arith.constant 0 : i32
    %c0_i32_0 = arith.constant 0 : i32
    %c0_i32_1 = arith.constant 0 : i32
    return %c0_i32, %c0_i32_0 : i32, i32
  }
  func.func @transform_9(%arg0: i32) -> (i32, i32) {
    %c0_i32 = arith.constant 0 : i32
    %c0_i32_0 = arith.constant 0 : i32
    %c0_i32_1 = arith.constant 0 : i32
    return %c0_i32, %c0_i32_0 : i32, i32
  }
  func.func @transform_10(%arg0: i32) -> (i32, i32) {
    %c0_i32 = arith.constant 0 : i32
    %c0_i32_0 = arith.constant 0 : i32
    %c0_i32_1 = arith.constant 0 : i32
    return %c0_i32, %c0_i32_0 : i32, i32
  }
  func.func @transform_11(%arg0: i32) -> (i32, i32) {
    %c0_i32 = arith.constant 0 : i32
    %c0_i32_0 = arith.constant 0 : i32
    %c0_i32_1 = arith.constant 0 : i32
    return %c0_i32, %c0_i32_0 : i32, i32
  }
  func.func @transform_12(%arg0: i32) -> (i32, i32) {
    %c0_i32 = arith.constant 0 : i32
    %c0_i32_0 = arith.constant 0 : i32
    %c0_i32_1 = arith.constant 0 : i32
    return %c0_i32, %c0_i32_0 : i32, i32
  }
  func.func @transform_13(%arg0: i32) -> (i32, i32) {
    %c0_i32 = arith.constant 0 : i32
    %c0_i32_0 = arith.constant 0 : i32
    %c0_i32_1 = arith.constant 0 : i32
    return %c0_i32, %c0_i32_0 : i32, i32
  }
  func.func @transform_14(%arg0: i32) -> (i32, i32) {
    %c0_i32 = arith.constant 0 : i32
    %c0_i32_0 = arith.constant 0 : i32
    %c0_i32_1 = arith.constant 0 : i32
    return %c0_i32, %c0_i32_0 : i32, i32
  }
  func.func @transform_15(%arg0: i32) -> (i32, i32) {
    %c0_i32 = arith.constant 0 : i32
    %c0_i32_0 = arith.constant 0 : i32
    %c0_i32_1 = arith.constant 0 : i32
    return %c0_i32, %c0_i32_0 : i32, i32
  }
  func.func @transform_16(%arg0: i32) -> (i32, i32) {
    %c0_i32 = arith.constant 0 : i32
    %c0_i32_0 = arith.constant 0 : i32
    %c0_i32_1 = arith.constant 0 : i32
    return %c0_i32, %c0_i32_0 : i32, i32
  }
  func.func @transform_17(%arg0: i32) -> (i32, i32) {
    %c0_i32 = arith.constant 0 : i32
    %c0_i32_0 = arith.constant 0 : i32
    %c0_i32_1 = arith.constant 0 : i32
    return %c0_i32, %c0_i32_0 : i32, i32
  }
  func.func @transform_18(%arg0: i32) -> (i32, i32) {
    %c0_i32 = arith.constant 0 : i32
    %c0_i32_0 = arith.constant 0 : i32
    %c0_i32_1 = arith.constant 0 : i32
    return %c0_i32, %c0_i32_0 : i32, i32
  }
  func.func @transform_19(%arg0: i32) -> (i32, i32) {
    %c0_i32 = arith.constant 0 : i32
    %c0_i32_0 = arith.constant 0 : i32
    %c0_i32_1 = arith.constant 0 : i32
    return %c0_i32, %c0_i32_0 : i32, i32
  }
  func.func @transform_20(%arg0: i32) -> (i32, i32) {
    %c0_i32 = arith.constant 0 : i32
    %c0_i32_0 = arith.constant 0 : i32
    %c0_i32_1 = arith.constant 0 : i32
    return %c0_i32, %c0_i32_0 : i32, i32
  }
  func.func @transform_21(%arg0: i32) -> (i32, i32) {
    %c0_i32 = arith.constant 0 : i32
    %c0_i32_0 = arith.constant 0 : i32
    %c0_i32_1 = arith.constant 0 : i32
    return %c0_i32, %c0_i32_0 : i32, i32
  }
  func.func @transform_22(%arg0: i32) -> (i32, i32) {
    %c0_i32 = arith.constant 0 : i32
    %c0_i32_0 = arith.constant 0 : i32
    %c0_i32_1 = arith.constant 0 : i32
    return %c0_i32, %c0_i32_0 : i32, i32
  }
}

</mosaic_0001>

<bundles_post_ra>
// kernel: forward.1
= control target key start
LH: loop header
LB: loop body
LE: loop exit
PB: predicated region body
PF: predicated region fallthrough
CT: control target
= control target key end

     0   :  { %s4134_s0 = inlined_call_operand.vmem [shape: f32[32,4], index: 0, kind: input, shape index: {}]   ;;  %s4135_s1 = inlined_call_operand.vmem [shape: f32[8,16], index: 1, kind: input, shape index: {}]   ;;  %s4136_s2 = inlined_call_operand.vmem [shape: s32[32,1], index: 2, kind: input, shape index: {}]   ;;  %s4137_s3 = inlined_call_operand.vmem [shape: f32[32,8], index: 3, kind: input, shape index: {}]   ;;  %s4138_s4 = inlined_call_operand.vmem [shape: f32[32,32], index: 4, kind: input, shape index: {}]   ;;  %s4139_s5 = inlined_call_operand.vmem [shape: f32[32,8], index: 5, kind: input, shape index: {}]   ;;  %s4140_s6 = inlined_call_operand.vmem [shape: f32[4,16], index: 6, kind: input, shape index: {}]   ;;  %s4141_s7 = inlined_call_operand.vmem [shape: f32[16,16], index: 7, kind: input, shape index: {}]   ;;  %s4142_s8 = inlined_call_operand.vmem [shape: f32[16,32], index: 8, kind: input, shape index: {}]   ;;  %s4143_s9 = inlined_call_operand.vmem [shape: f32[32,32], index: 9, kind: input, shape index: {}]   ;;  %s4144_s10 = inlined_call_operand.vmem [shape: f32[3,32], index: 10, kind: input, shape index: {}]   ;;  %s4145_s11 = inlined_call_operand.vmem [shape: f32[128,32], index: 11, kind: input, shape index: {}]   ;;  %s4146_s12 = inlined_call_operand.vmem [shape: f32[32,32], index: 12, kind: input, shape index: {}]   ;;  %s4147_s13 = inlined_call_operand.vmem [shape: f32[128,32], index: 13, kind: input, shape index: {}]   ;;  %s4148_s14 = inlined_call_operand.vmem [shape: f32[32,32], index: 14, kind: input, shape index: {}]   ;;  %s4149_s15 = inlined_call_operand.vmem [shape: f32[32,32], index: 15, kind: input, shape index: {}]   ;;  %s4150_s16 = inlined_call_operand.vmem [shape: f32[32,512], index: 16, kind: input, shape index: {}]   ;;  %s4151_s17 = inlined_call_operand.vmem [shape: f32[512,16], index: 17, kind: input, shape index: {}]   ;;  %s4152_s18 = inlined_call_operand.vmem [shape: f32[8,32], index: 18, kind: input, shape index: {}]   ;;  %s4153_s19 = inlined_call_operand.vmem [shape: f32[1,512], index: 19, kind: input, shape index: {}]   ;;  %s4154_s20 = inlined_call_operand.vmem [shape: f32[1,16], index: 20, kind: input, shape index: {}]   ;;  %s4155_s21 = inlined_call_operand.hbm [shape: f32[2,16], index: 21, kind: output, shape index: {0}]   ;;  %s4156_s22 = inlined_call_operand.hbm [shape: f32[2,32], index: 22, kind: output, shape index: {1}]  }
   0x1   :  { %4162 = sst [smem:[#allocation8_spill]] %s4134_s0 }
   0x2   :  { %4163 = sst [smem:[#allocation9_spill]] %s4135_s1 }
   0x3   :  { %4164 = sst [smem:[#allocation10_spill]] %s4136_s2 }
   0x4   :  { %4165 = sst [smem:[#allocation11_spill]] %s4137_s3 }
   0x5   :  { %4166 = sst [smem:[#allocation12_spill]] %s4138_s4 }
   0x6   :  { %4167 = sst [smem:[#allocation13_spill]] %s4139_s5 }
   0x7   :  { %4168 = sst [smem:[#allocation14_spill]] %s4140_s6 }
   0x8   :  { %28 = vsyncpa [#allocation3], 0  ;;  %v73_v0 = vld [vmem:[%s4141_s7] sm:$0xff]  ;;  %v74_v1 = vld [vmem:[%s4141_s7 + $0x8] sm:$0xff]  ;;  %v3365_v2 = vmov 0.0|0.0   ;;  %vm3366_vm0 = vmmov 0  }
   0x9   :  { %3118 = vmatprep.subr.bf16.mxu0 %v3365_v2  ;;  %v3119_v3 = vpack.c.bf16 %v74_v1, %v73_v0  ;;  %v3367_v4 = vmov 0.0  }
   0xa   :  { %2882 = vmatprep.mubr.msk.f32.mxu0 %vm3366_vm0, %v3367_v4 }
   0xb   :  { %29 = vsyncpa [#allocation5], 0  ;;  %3120 = vmatpush3.bf16.msra.mxu0 %v3119_v3  ;;  %s4169_s23 = sld [smem:[#allocation9_spill]]  ;;  %vm75_vm1 = vcmask 130048   ;;  %s4170_s5 = sld [smem:[#allocation14_spill]]  ;;  %vm269_vm2 = vcmask 1043456   ;;  %v487_v47 = vlaneseq }
   0xc   :  { %s4171_s25 = sld [smem:[#allocation11_spill]]  ;;  %vm153_vm3 = vcmask 64512   ;;  %s4172_s27 = sld [smem:[#allocation8_spill]]  ;;  %vm256_vm4 = vcmask 31744   ;;  %v375_v19 = vld [vmem:[%s4142_s8] sm:$0xff]  ;;  %v376_v20 = vld [vmem:[%s4142_s8 + $0x8] sm:$0xff] }
   0xd   :  { %v3121_v21 = vpack.c.bf16 %v376_v20, %v375_v19  ;;  %v3368_v24 = vmov 0   ;;  %v517_v27 = vld [vmem:[%s4144_s10] sm:$0x7]  ;;  %vm531_vm5 = vcmask 1042432   ;;  %v514_v29 = vld [vmem:[%s4143_s9 + $0x8] sm:$0xff]  ;;  %v488_v51 = vand.u32 127, %v487_v47 }
   0xe   :  { %3315 = vset.pattern.permute.xlu0 %v3368_v24  ;;  %3316 = vset.pattern.permute.xlu1 %v3368_v24  ;;  %v513_v28 = vld [vmem:[%s4143_s9] sm:$0xff]  ;;  %vm518_vm6 = vcmask 23552   ;;  %v515_v60 = vld [vmem:[%s4143_s9 + $0x10] sm:$0xff]  ;;  %v516_v61 = vld [vmem:[%s4143_s9 + $0x18] sm:$0xff]  ;;  %vm620_vm11 = vcmask 261120   ;;  %s4174_s1 = sld [smem:[#allocation12_spill]] }
   0xf   :  { %v3125_v30 = vpack.c.bf16 %v514_v29, %v513_v28  ;;  %v2646_v32 = vld [vmem:[%s4152_s18] ss:$0 sm:$0xff]  ;;  %v3129_v62 = vpack.c.bf16 %v516_v61, %v515_v60  ;;  %v2647_v63 = vld [vmem:[%s4152_s18 + $0x1] ss:$0 sm:$0xff]  ;;  %vm2606_vm12 = vcmask 254976  }
  0x10   :  { %v1259_v61 = vld [vmem:[%s4145_s11 + $0x60] sm:$0xff] }
  0x11   :  { %v72_v5 = vld [vmem:[%s4169_s23] sm:$0xff] }
  0x12   :  { %2883 = vmatmul.mubr.msk.f32.vlgmr.msra.gmra.mrb[0].mxu0 %vm75_vm1, %v72_v5  ;;  %v255_v6 = vld [vmem:[%s4170_s5] sm:$0xf]  ;;  %v252_v9 = vld [vmem:[%s4172_s27 + $0x8] sm:$0xff]  ;;  %v151_v13 = vld [vmem:[%s4171_s25 + $0x10] sm:$0xff]  ;;  %s4175_s5 = sld [smem:[#allocation13_spill]] }
  0x13   :  { %2893 = vmatprep.subr.msk.mxu0 %vm269_vm2, %v255_v6  ;;  %v149_v7 = vld [vmem:[%s4171_s25] sm:$0xff]  ;;  %v150_v11 = vld [vmem:[%s4171_s25 + $0x8] sm:$0xff]  ;;  %v152_v14 = vld [vmem:[%s4171_s25 + $0x18] sm:$0xff] }
  0x14   :  { %v251_v8 = vld [vmem:[%s4172_s27] sm:$0xff]  ;;  %2887 = vmatprep.mubr.msk.f32.mxu1 %vm153_vm3, %v149_v7  ;;  %2894 = vmatpush3.msk.msra.mxu0 %vm269_vm2, %v255_v6  ;;  %v253_v15 = vld [vmem:[%s4172_s27 + $0x10] sm:$0xff]  ;;  %v254_v16 = vld [vmem:[%s4172_s27 + $0x18] sm:$0xff]  ;;  %s4173_s27 = sld [smem:[#allocation10_spill]] }
  0x15   :  { %2895 = vmatprep.mubr.msk.f32.mxu0 %vm256_vm4, %v251_v8  ;;  %2911 = vmatprep.subr.msk.mxu0 %vm531_vm5, %v517_v27  ;;  %v731_v29 = vld [vmem:[%s4174_s1] sm:$0xff] }
  0x16   :  { %2896 = vmatmul.mubr.msk.f32.vlgmr.msra.gmra.mrb[2].mxu0 %vm256_vm4, %v252_v9 }
  0x17   :  { %2912 = vmatpush3.msk.msra.mxu0 %vm531_vm5, %v517_v27 }
  0x18   :  { %3126 = vmatprep.subr.bf16.mxu0 %v3125_v30 }
  0x1a   :  { %v483_v22 = vld [vmem:[%s4173_s27] sm:$0xff]  ;;  %v485_v23 = vld [vmem:[%s4173_s27 + $0x10] sm:$0xff]  ;;  %v484_v25 = vld [vmem:[%s4173_s27 + $0x8] sm:$0xff] }
  0x1b   :  { %490 = vperm.xlu0 %3315, %v483_v22   ;;  %496 = vperm.xlu1 %3316, %v485_v23   ;;  %v486_v26 = vld [vmem:[%s4173_s27 + $0x18] sm:$0xff] }
  0x1f   :  { %493 = vperm.xlu0 %3315, %v484_v25   ;;  %499 = vperm.xlu1 %3316, %v486_v26  }
  0x9a   :  { %v491_v52 = vpop.permute.xlu0 %490  ;;  %v497_v53 = vpop.permute.xlu1 %496 }
  0x9b   :  { %vm501_vm7 = vcmp.eq.s32.totalorder %v491_v52, %v488_v51  ;;  %vm503_vm8 = vcmp.eq.s32.totalorder %v497_v53, %v488_v51  ;;  %v1109_v53 = vld [vmem:[%s4145_s11 + $0x50] sm:$0xff] }
  0x9c   :  { %v2652_v54 = vsel %vm501_vm7, 1.0, %v3367_v4  ;;  %v2654_v57 = vsel %vm503_vm8, 1.0, %v3367_v4 }
  0x9d   :  { %2913 = vmatprep.mubr.msk.f32.mxu0 %vm518_vm6, %v2652_v54  ;;  %v1110_v54 = vld [vmem:[%s4145_s11 + $0x58] sm:$0xff] }
  0x9e   :  { %v494_v55 = vpop.permute.xlu0 %493  ;;  %v500_v56 = vpop.permute.xlu1 %499 }
  0x9f   :  { %vm502_vm9 = vcmp.eq.s32.totalorder %v494_v55, %v488_v51  ;;  %vm504_vm10 = vcmp.eq.s32.totalorder %v500_v56, %v488_v51  ;;  %v1108_v51 = vld [vmem:[%s4145_s11 + $0x48] sm:$0xff]  ;;  %v3167_v55 = vpack.c.bf16 %v1110_v54, %v1109_v53  ;;  %v1805_v53 = vld [vmem:[%s4147_s13 + $0x50] sm:$0xff]  ;;  %v1806_v54 = vld [vmem:[%s4147_s13 + $0x58] sm:$0xff] }
  0xa0   :  { %v2653_v58 = vsel %vm502_vm9, 1.0, %v3367_v4  ;;  %v2655_v59 = vsel %vm504_vm10, 1.0, %v3367_v4 }
  0xa1   :  { %2914 = vmatmul.mubr.msk.f32.vlgmr.msra.gmra.mrb[4].mxu0 %vm518_vm6, %v2653_v58 }
  0xa2   :  { %3128 = vmatpush3.bf16.msra.mxu0 %v3125_v30  ;;  %2916 = vmatprep.mubr.msk.f32.mxu0 %vm518_vm6, %v2654_v57  ;;  %v805_v30 = vld [vmem:[%s4145_s11] sm:$0xff] }
  0xa3   :  { %3130 = vmatprep.subr.bf16.mxu0 %v3129_v62 }
  0xa5   :  { %2917 = vmatmul.mubr.msk.f32.gmra.mrb[6].mxu0 %vm518_vm6, %v2655_v59 }
  0xa6   :  { %3132 = vmatpush3.bf16.msra.mxu0 %v3129_v62  ;;  %v1260_v62 = vld [vmem:[%s4145_s11 + $0x68] sm:$0xff] }
  0xa7   :  { %3145 = vmatprep.subr.bf16.mxu0 %v3365_v2 }
  0xe5   :  { %v145_v10 = vpop.f32.mrb[0].mxu0 }
  0xe6   :  { %v2884_v12 = vpop.f32.mrb[1].mxu0  ;;  %2885 = vmatprep.subr.mxu1 %v145_v10 }
  0xe7   :  { %2886 = vmatpush3.msra.mxu1 %v145_v10 }
  0xe8   :  { %2888 = vmatmul.mubr.msk.f32.vlgmr.msra.gmra.mrb[0].mxu1 %vm153_vm3, %v150_v11  ;;  %3303 = vmatprep.subr.msk.mxu1 %vm269_vm2, %v255_v6 }
  0xe9   :  { %2890 = vmatprep.mubr.msk.f32.mxu1 %vm153_vm3, %v151_v13  ;;  %3304 = vmatpush3.msk.msra.mxu1 %vm269_vm2, %v255_v6  ;;  %v2897_v17 = vpop.f32.mrb[2].mxu0 }
  0xea   :  { %v339_v18 = vpop.f32.mrb[3].mxu0  ;;  %3122 = vmatprep.subr.bf16.mxu1 %v3121_v21 }
  0xec   :  { %2891 = vmatmul.mubr.msk.f32.gmra.mrb[2].mxu1 %vm153_vm3, %v152_v14  ;;  %v2665_v14 = vld [vmem:[%s4152_s18 + $0x2] ss:$0 sm:$0xff] }
  0xed   :  { %2898 = vmatprep.mubr.msk.f32.mxu1 %vm256_vm4, %v253_v15 }
  0xf0   :  { %2899 = vmatmul.mubr.msk.f32.vlgmr.msra.gmra.mrb[4].mxu1 %vm256_vm4, %v254_v16 }
  0xf1   :  { %3124 = vmatpush3.bf16.msra.mxu1 %v3121_v21 }
  0xf2   :  { %3133 = vmatprep.subr.bf16.mxu1 %v3365_v2 }
 0x1bb   :  { %v2889_v31 = vpop.f32.mrb[0].mxu1 }
 0x1bc   :  { %v359_v33 = vsub.f32 %v2897_v17, %v2889_v31  ;;  %v232_v34 = vpop.f32.mrb[1].mxu1  ;;  %v806_v31 = vld [vmem:[%s4145_s11 + $0x8] sm:$0xff] }
 0x1bd   :  { %v358_v35 = vsub.f32 %v339_v18, %v232_v34  ;;  %v807_v34 = vld [vmem:[%s4145_s11 + $0x10] sm:$0xff] }
 0x1be   :  { %v368_v36 = vadd.f32 %v2646_v32, %v359_v33  ;;  %v3152_v33 = vpack.c.bf16 %v806_v31, %v805_v30  ;;  %v2675_v30 = vld [vmem:[%s4152_s18 + $0x4] ss:$0 sm:$0xff] }
 0x1bf   :  { %v367_v37 = vadd.f32 %v2646_v32, %v358_v35  ;;  %v2892_v38 = vpop.f32.mrb[2].mxu1  ;;  %v808_v35 = vld [vmem:[%s4145_s11 + $0x18] sm:$0xff] }
 0x1c0   :  { %v242_v39 = vpop.f32.mrb[3].mxu1  ;;  %v372_v41 = vmax.f32 %v368_v36, 0.0  ;;  %v3155_v36 = vpack.c.bf16 %v808_v35, %v807_v34  ;;  %v1427_v35 = vld [vmem:[%s4175_s5] sm:$0xff] }
 0x1c1   :  { %v371_v40 = vmax.f32 %v367_v37, 0.0  ;;  %v883_v37 = vld [vmem:[%s4145_s11 + $0x20] sm:$0xff] }
 0x1c3   :  { %v2900_v42 = vpop.f32.mrb[4].mxu1  ;;  %2905 = vmatprep.mubr.msk.f32.mxu1 %vm75_vm1, %v371_v40  ;;  %v885_v40 = vld [vmem:[%s4145_s11 + $0x30] sm:$0xff] }
 0x1c4   :  { %v361_v43 = vsub.f32 %v2900_v42, %v2892_v38  ;;  %v349_v44 = vpop.f32.mrb[5].mxu1  ;;  %2906 = vmatmul.mubr.msk.f32.vlgmr.msra.gmra.mrb[6].mxu1 %vm75_vm1, %v372_v41  ;;  %v884_v38 = vld [vmem:[%s4145_s11 + $0x28] sm:$0xff]  ;;  %v886_v41 = vld [vmem:[%s4145_s11 + $0x38] sm:$0xff] }
 0x1c5   :  { %v360_v45 = vsub.f32 %v349_v44, %v242_v39  ;;  %v3146_v39 = vpack.c.bf16 %v884_v38, %v883_v37  ;;  %v3149_v42 = vpack.c.bf16 %v886_v41, %v885_v40  ;;  %v1502_v37 = vld [vmem:[%s4147_s13 + $0x8] sm:$0xff]  ;;  %v1503_v40 = vld [vmem:[%s4147_s13 + $0x10] sm:$0xff]  ;;  %v1504_v41 = vld [vmem:[%s4147_s13 + $0x18] sm:$0xff] }
 0x1c6   :  { %v370_v46 = vadd.f32 %v2646_v32, %v361_v43  ;;  %v1505_v38 = vld [vmem:[%s4175_s5 + $0x8] sm:$0xff] }
 0x1c7   :  { %v369_v48 = vadd.f32 %v2646_v32, %v360_v45  ;;  %v809_v32 = vld [vmem:[%s4174_s1 + $0x8] sm:$0xff] }
 0x1c8   :  { %v374_v50 = vmax.f32 %v370_v46, 0.0 }
 0x1c9   :  { %v373_v49 = vmax.f32 %v369_v48, 0.0  ;;  %v1033_v48 = vld [vmem:[%s4174_s1 + $0x10] sm:$0xff] }
 0x1cb   :  { %2908 = vmatprep.mubr.msk.f32.mxu1 %vm75_vm1, %v373_v49  ;;  %v1185_v49 = vld [vmem:[%s4174_s1 + $0x18] sm:$0xff] }
 0x1cc   :  { %2909 = vmatmul.mubr.msk.f32.gmra.mrb[8].mxu1 %vm75_vm1, %v374_v50  ;;  %v1107_v50 = vld [vmem:[%s4145_s11 + $0x40] sm:$0xff] }
 0x1cd   :  { %2941 = vmatprep.mubr.msk.f32.mxu1 %vm3366_vm0, %v3367_v4  ;;  %v3164_v52 = vpack.c.bf16 %v1108_v51, %v1107_v50  ;;  %v1803_v50 = vld [vmem:[%s4147_s13 + $0x40] sm:$0xff]  ;;  %v1804_v51 = vld [vmem:[%s4147_s13 + $0x48] sm:$0xff] }
 0x297   :  { %v2907_v0 = vpop.f32.mrb[6].mxu1 }
 0x298   :  { %v466_v1 = vadd.f32 %v2907_v0, %v2647_v63  ;;  %v460_v3 = vpop.f32.mrb[7].mxu1  ;;  %v1261_v0 = vld [vmem:[%s4145_s11 + $0x70] sm:$0xff] }
 0x299   :  { %v461_v5 = vadd.f32 %v2647_v63, %v460_v3 }
 0x29a   :  { %v480_v7 = vmax.f32 %v466_v1, 0.0  ;;  %v1262_v1 = vld [vmem:[%s4145_s11 + $0x78] sm:$0xff] }
 0x29b   :  { %v479_v6 = vmax.f32 %v461_v5, 0.0 }
 0x29d   :  { %2927 = vmatprep.mubr.msk.f32.mxu0 %vm620_vm11, %v479_v6  ;;  %v3179_v6 = vpack.c.bf16 %v1262_v1, %v1261_v0 }
 0x29e   :  { %2928 = vmatmul.mubr.msk.f32.vlgmr.msra.gmra.mrb[4].mxu0 %vm620_vm11, %v480_v7 }
 0x29f   :  { %v2910_v8 = vpop.f32.mrb[8].mxu1  ;;  %3147 = vmatpush3.bf16.msra.mxu0 %v3146_v39 }
 0x2a0   :  { %v476_v9 = vadd.f32 %v2910_v8, %v2647_v63  ;;  %v470_v10 = vpop.f32.mrb[9].mxu1  ;;  %3148 = vmatprep.subr.bf16.mxu0 %v3365_v2 }
 0x2a1   :  { %v471_v11 = vadd.f32 %v2647_v63, %v470_v10  ;;  %v3176_v63 = vpack.c.bf16 %v1260_v62, %v1259_v61  ;;  %v1345_v10 = vld [vmem:[%s4146_s12 + $0x8] sm:$0xff] }
 0x2a2   :  { %v482_v13 = vmax.f32 %v476_v9, 0.0  ;;  %v1344_v9 = vld [vmem:[%s4146_s12] sm:$0xff] }
 0x2a3   :  { %v481_v12 = vmax.f32 %v471_v11, 0.0  ;;  %3150 = vmatpush3.bf16.msra.mxu0 %v3149_v42  ;;  %v3182_v11 = vpack.c.bf16 %v1345_v10, %v1344_v9  ;;  %v3197_v42 = vpack.c.bf16 %v1504_v41, %v1503_v40  ;;  %v2040_v9 = vld [vmem:[%s4148_s14] sm:$0xff]  ;;  %v2041_v10 = vld [vmem:[%s4148_s14 + $0x8] sm:$0xff]  ;;  %v2212_v40 = vld [vmem:[%s4150_s16 + $0x30] sm:$0xff] }
 0x2a4   :  { %3157 = vmatprep.subr.bf16.mxu0 %v3365_v2 }
 0x2a5   :  { %2930 = vmatprep.mubr.msk.f32.mxu0 %vm620_vm11, %v481_v12  ;;  %v1346_v12 = vld [vmem:[%s4146_s12 + $0x10] sm:$0xff] }
 0x2a6   :  { %2931 = vmatmul.mubr.msk.f32.gmra.mrb[6].mxu0 %vm620_vm11, %v482_v13  ;;  %v1347_v13 = vld [vmem:[%s4146_s12 + $0x18] sm:$0xff] }
 0x2a7   :  { %2963 = vmatprep.mubr.msk.f32.mxu0 %vm3366_vm0, %v3367_v4 }
 0x371   :  { %v2929_v15 = vpop.f32.mrb[4].mxu0 }
 0x372   :  { %v724_v16 = vadd.f32 %v2929_v15, %v2665_v14  ;;  %v699_v17 = vpop.f32.mrb[5].mxu0 }
 0x373   :  { %v723_v18 = vadd.f32 %v2665_v14, %v699_v17 }
 0x374   :  { %v728_v19 = vmax.f32 %v724_v16, 0.0 }
 0x375   :  { %v727_v20 = vmax.f32 %v723_v18, 0.0 }
 0x377   :  { %v3134_v21 = vpack.c.bf16 %v728_v19, %v727_v20  ;;  %v2674_v19 = vld [vmem:[%s4152_s18 + $0x3] ss:$0 sm:$0xff] }
 0x379   :  { %v2932_v22 = vpop.f32.mrb[6].mxu0  ;;  %3135 = vmatpush3.bf16.msra.mxu1 %v3134_v21 }
 0x37a   :  { %v726_v23 = vadd.f32 %v2932_v22, %v2665_v14  ;;  %v709_v24 = vpop.f32.mrb[7].mxu0  ;;  %3136 = vmatprep.subr.bf16.mxu1 %v3365_v2 }
 0x37b   :  { %v725_v25 = vadd.f32 %v2665_v14, %v709_v24  ;;  %v3185_v14 = vpack.c.bf16 %v1347_v13, %v1346_v12  ;;  %v1579_v24 = vld [vmem:[%s4147_s13 + $0x20] sm:$0xff]  ;;  %v2042_v12 = vld [vmem:[%s4148_s14 + $0x10] sm:$0xff]  ;;  %v2043_v13 = vld [vmem:[%s4148_s14 + $0x18] sm:$0xff] }
 0x37c   :  { %v730_v26 = vmax.f32 %v726_v23, 0.0 }
 0x37d   :  { %v729_v27 = vmax.f32 %v725_v25, 0.0  ;;  %v1580_v25 = vld [vmem:[%s4147_s13 + $0x28] sm:$0xff] }
 0x37f   :  { %v3137_v28 = vpack.c.bf16 %v730_v26, %v729_v27  ;;  %v3188_v26 = vpack.c.bf16 %v1580_v25, %v1579_v24  ;;  %v1581_v27 = vld [vmem:[%s4147_s13 + $0x30] sm:$0xff] }
 0x381   :  { %3138 = vmatpush3.bf16.msra.mxu1 %v3137_v28 }
 0x382   :  { %3139 = vmatprep.subr.bf16.mxu1 %v3365_v2 }
 0x384   :  { %2942 = vmatmul.mubr.msk.f32.vlgmr.msra.gmra.mrb[10].mxu1 %vm620_vm11, %v731_v29 }
 0x385   :  { %3141 = vmatpush3.bf16.msra.mxu1 %v3134_v21  ;;  %2952 = vmatprep.mubr.msk.f32.mxu1 %vm3366_vm0, %v3367_v4 }
 0x386   :  { %3142 = vmatprep.subr.bf16.mxu1 %v3365_v2 }
 0x389   :  { %3144 = vmatpush3.bf16.msra.mxu1 %v3137_v28 }
 0x38a   :  { %3151 = vmatprep.subr.bf16.mxu1 %v3365_v2 }
 0x38c   :  { %2953 = vmatmul.mubr.msk.f32.vlgmr.msra.gmra.mrb[12].mxu1 %vm620_vm11, %v809_v32 }
 0x38d   :  { %3153 = vmatpush3.bf16.msra.mxu1 %v3152_v33  ;;  %2974 = vmatprep.mubr.msk.f32.mxu1 %vm3366_vm0, %v3367_v4 }
 0x38e   :  { %3154 = vmatprep.subr.bf16.mxu1 %v3365_v2 }
 0x391   :  { %3156 = vmatpush3.bf16.msra.mxu1 %v3155_v36  ;;  %v1501_v36 = vld [vmem:[%s4147_s13] sm:$0xff] }
 0x392   :  { %3163 = vmatprep.subr.bf16.mxu1 %v3365_v2  ;;  %v3194_v39 = vpack.c.bf16 %v1502_v37, %v1501_v36 }
 0x457   :  { %v801_v43 = vpop.f32.mrb[10].mxu1 }
 0x458   :  { %v2943_v44 = vpop.f32.mrb[11].mxu1  ;;  %2975 = vmatmul.mubr.msk.f32.vlgmr.msra.gmra.mrb[14].mxu1 %vm620_vm11, %v801_v43 }
 0x459   :  { %2996 = vmatprep.mubr.msk.f32.mxu1 %vm3366_vm0, %v3367_v4  ;;  %3165 = vmatpush3.bf16.msra.mxu1 %v3164_v52  ;;  %v3200_v52 = vpack.c.bf16 %v1804_v51, %v1803_v50  ;;  %v2221_v51 = vld [vmem:[%s4150_s16 + $0x78] sm:$0xff] }
 0x45a   :  { %3166 = vmatprep.subr.bf16.mxu1 %v3365_v2 }
 0x45d   :  { %3168 = vmatpush3.bf16.msra.mxu1 %v3167_v55  ;;  %v1955_v55 = vld [vmem:[%s4147_s13 + $0x60] sm:$0xff] }
 0x45e   :  { %3175 = vmatprep.subr.bf16.mxu1 %v3365_v2 }
 0x45f   :  { %v879_v45 = vpop.f32.mrb[12].mxu1 }
 0x460   :  { %v2954_v46 = vpop.f32.mrb[13].mxu1  ;;  %2964 = vmatmul.mubr.msk.f32.vlgmr.msra.gmra.mrb[8].mxu0 %vm620_vm11, %v879_v45 }
 0x461   :  { %3159 = vmatpush3.bf16.msra.mxu0 %v3134_v21  ;;  %2985 = vmatprep.mubr.msk.f32.mxu0 %vm3366_vm0, %v3367_v4 }
 0x462   :  { %3160 = vmatprep.subr.bf16.mxu0 %v3365_v2 }
 0x465   :  { %3162 = vmatpush3.bf16.msra.mxu0 %v3137_v28 }
 0x466   :  { %3169 = vmatprep.subr.bf16.mxu0 %v3365_v2 }
 0x468   :  { %2986 = vmatmul.mubr.msk.f32.vlgmr.msra.gmra.mrb[10].mxu0 %vm620_vm11, %v1033_v48  ;;  %v1729_v48 = vld [vmem:[%s4175_s5 + $0x10] sm:$0xff] }
 0x469   :  { %3171 = vmatpush3.bf16.msra.mxu0 %v3134_v21  ;;  %3007 = vmatprep.mubr.msk.f32.mxu0 %vm3366_vm0, %v3367_v4 }
 0x46a   :  { %3172 = vmatprep.subr.bf16.mxu0 %v3365_v2 }
 0x46d   :  { %3174 = vmatpush3.bf16.msra.mxu0 %v3137_v28  ;;  %v1582_v28 = vld [vmem:[%s4147_s13 + $0x38] sm:$0xff] }
 0x46e   :  { %3181 = vmatprep.subr.bf16.mxu0 %v3365_v2  ;;  %v3191_v29 = vpack.c.bf16 %v1582_v28, %v1581_v27  ;;  %v2126_v27 = vld [vmem:[%s4149_s15 + $0x18] sm:$0xff] }
 0x470   :  { %3008 = vmatmul.mubr.msk.f32.vlgmr.msra.gmra.mrb[12].mxu0 %vm620_vm11, %v1185_v49  ;;  %v1881_v49 = vld [vmem:[%s4175_s5 + $0x18] sm:$0xff] }
 0x471   :  { %3029 = vmatprep.mubr.msk.f32.mxu0 %vm3366_vm0, %v3367_v4  ;;  %3183 = vmatpush3.bf16.msra.mxu0 %v3182_v11  ;;  %v3212_v11 = vpack.c.bf16 %v2041_v10, %v2040_v9  ;;  %v2412_v9 = vld [vmem:[%s4151_s17 + $0x98] sm:$0xff]  ;;  %v2443_v10 = vld [vmem:[%s4151_s17 + $0x190] sm:$0xff] }
 0x472   :  { %3184 = vmatprep.subr.bf16.mxu0 %v3365_v2 }
 0x475   :  { %3186 = vmatpush3.bf16.msra.mxu0 %v3185_v14  ;;  %v3215_v14 = vpack.c.bf16 %v2043_v13, %v2042_v12 }
 0x476   :  { %3187 = vmatprep.subr.bf16.mxu0 %v3365_v2 }
 0x52b   :  { %v1029_v56 = vpop.f32.mrb[14].mxu1 }
 0x52c   :  { %v2976_v57 = vpop.f32.mrb[15].mxu1 }
 0x52d   :  { %v1956_v57 = vld [vmem:[%s4147_s13 + $0x68] sm:$0xff] }
 0x533   :  { %v956_v58 = vpop.f32.mrb[8].mxu0 }
 0x534   :  { %v1030_v59 = vadd.f32 %v1029_v56, %v956_v58  ;;  %v2965_v60 = vpop.f32.mrb[9].mxu0  ;;  %v3203_v56 = vpack.c.bf16 %v1806_v54, %v1805_v53  ;;  %v3206_v58 = vpack.c.bf16 %v1956_v57, %v1955_v55  ;;  %v2216_v55 = vld [vmem:[%s4150_s16 + $0x50] sm:$0xff] }
 0x535   :  { %v1958_v60 = vld [vmem:[%s4147_s13 + $0x78] sm:$0xff] }
 0x53b   :  { %v1103_v3 = vpop.f32.mrb[10].mxu0 }
 0x53c   :  { %v2987_v5 = vpop.f32.mrb[11].mxu0  ;;  %2997 = vmatmul.mubr.msk.f32.vlgmr.msra.gmra.mrb[16].mxu1 %vm620_vm11, %v1103_v3 }
 0x53d   :  { %3177 = vmatpush3.bf16.msra.mxu1 %v3176_v63  ;;  %3018 = vmatprep.mubr.msk.f32.mxu1 %vm3366_vm0, %v3367_v4 }
 0x53e   :  { %3178 = vmatprep.subr.bf16.mxu1 %v3365_v2 }
 0x541   :  { %3180 = vmatpush3.bf16.msra.mxu1 %v3179_v6 }
 0x542   :  { %3032 = vmatprep.subr.mxu1 %v3367_v4 }
 0x543   :  { %v1255_v7 = vpop.f32.mrb[12].mxu0 }
 0x544   :  { %v3009_v8 = vpop.f32.mrb[13].mxu0  ;;  %3019 = vmatmul.mubr.msk.f32.vlgmr.msra.gmra.mrb[18].mxu1 %vm620_vm11, %v1255_v7 }
 0x545   :  { %3034 = vmatprep.mubr.msk.f32.mxu1 %vm3366_vm0, %v3367_v4 }
 0x60f   :  { %v1180_v15 = vpop.f32.mrb[16].mxu1 }
 0x610   :  { %v1184_v16 = vadd.f32 %v1180_v15, %v1030_v59  ;;  %v2998_v17 = vpop.f32.mrb[17].mxu1  ;;  %v1957_v59 = vld [vmem:[%s4147_s13 + $0x70] sm:$0xff]  ;;  %v2123_v15 = vld [vmem:[%s4149_s15] sm:$0xff] }
 0x611   :  { %v3209_v61 = vpack.c.bf16 %v1958_v60, %v1957_v59  ;;  %v2410_v59 = vld [vmem:[%s4151_s17 + $0x88] sm:$0xff]  ;;  %v2441_v60 = vld [vmem:[%s4151_s17 + $0x180] sm:$0xff] }
 0x617   :  { %v1332_v18 = vpop.f32.mrb[18].mxu1 }
 0x618   :  { %v1336_v20 = vadd.f32 %v1332_v18, %v1184_v16  ;;  %v3020_v21 = vpop.f32.mrb[19].mxu1  ;;  %v2124_v16 = vld [vmem:[%s4149_s15 + $0x8] sm:$0xff] }
 0x619   :  { %v3218_v17 = vpack.c.bf16 %v2124_v16, %v2123_v15  ;;  %v2395_v16 = vld [vmem:[%s4151_s17 + $0x10] sm:$0xff] }
 0x61a   :  { %v1342_v22 = vadd.f32 %v2674_v19, %v1336_v20 }
 0x61c   :  { %v1343_v23 = vmax.f32 %v1342_v22, 0.0  ;;  %v2685_v22 = vld [vmem:[%s4152_s18 + $0x5] ss:$0 sm:$0xff] }
 0x61e   :  { %3030 = vmatmul.mubr.msk.f32.vlgmr.msra.gmra.mrb[14].mxu0 %vm620_vm11, %v1343_v23 }
 0x61f   :  { %3050 = vmatprep.mubr.msk.f32.mxu0 %vm3366_vm0, %v3367_v4  ;;  %3189 = vmatpush3.bf16.msra.mxu0 %v3188_v26 }
 0x620   :  { %3190 = vmatprep.subr.bf16.mxu0 %v3365_v2 }
 0x623   :  { %3192 = vmatpush3.bf16.msra.mxu0 %v3191_v29  ;;  %v2207_v29 = vld [vmem:[%s4150_s16 + $0x8] sm:$0xff] }
 0x624   :  { %3064 = vmatprep.subr.mxu0 %v3367_v4 }
 0x6f1   :  { %v1422_v31 = vpop.f32.mrb[14].mxu0 }
 0x6f2   :  { %v1423_v32 = vadd.f32 %v2675_v30, %v1422_v31  ;;  %v3031_v33 = vpop.f32.mrb[15].mxu0  ;;  %v2211_v30 = vld [vmem:[%s4150_s16 + $0x28] sm:$0xff]  ;;  %v2209_v31 = vld [vmem:[%s4150_s16 + $0x18] sm:$0xff] }
 0x6f3   :  { %v2213_v33 = vld [vmem:[%s4150_s16 + $0x38] sm:$0xff] }
 0x6f4   :  { %v1426_v34 = vmax.f32 %v1423_v32, 0.0  ;;  %v3223_v32 = vpack.c.bf16 %v2211_v30, %v2207_v29  ;;  %v3231_v36 = vpack.c.bf16 %v2213_v33, %v2209_v31  ;;  %v2398_v29 = vld [vmem:[%s4151_s17 + $0x28] sm:$0xff] }
 0x6f5   :  { %v2430_v33 = vld [vmem:[%s4151_s17 + $0x128] sm:$0xff] }
 0x6f6   :  { %3033 = vmatpush3.msra.mxu1 %v1426_v34 }
 0x6f7   :  { %3035 = vmatmul.mubr.msk.f32.vlgmr.msra.gmra.mrb[20].mxu1 %vm153_vm3, %v1427_v35  ;;  %3037 = vmatprep.subr.mxu1 %v3367_v4  ;;  %v2210_v35 = vld [vmem:[%s4150_s16 + $0x20] sm:$0xff] }
 0x6f8   :  { %3038 = vmatpush3.msra.mxu1 %v1426_v34  ;;  %3039 = vmatprep.mubr.msk.f32.mxu1 %vm3366_vm0, %v3367_v4 }
 0x6f9   :  { %3193 = vmatprep.subr.bf16.mxu1 %v3365_v2 }
 0x6fb   :  { %3040 = vmatmul.mubr.msk.f32.vlgmr.msra.gmra.mrb[22].mxu1 %vm153_vm3, %v1505_v38  ;;  %v2686_v38 = vld [vmem:[%s4152_s18 + $0x6] ss:$0 sm:$0xff] }
 0x6fc   :  { %3195 = vmatpush3.bf16.msra.mxu1 %v3194_v39  ;;  %3061 = vmatprep.mubr.msk.f32.mxu1 %vm3366_vm0, %v3367_v4  ;;  %v2208_v39 = vld [vmem:[%s4150_s16 + $0x10] sm:$0xff] }
 0x6fd   :  { %3196 = vmatprep.subr.bf16.mxu1 %v3365_v2 }
 0x700   :  { %3198 = vmatpush3.bf16.msra.mxu1 %v3197_v42 }
 0x701   :  { %3199 = vmatprep.subr.bf16.mxu1 %v3365_v2 }
 0x7ca   :  { %v1497_v43 = vpop.f32.mrb[20].mxu1 }
 0x7cb   :  { %v3036_v44 = vpop.f32.mrb[21].mxu1  ;;  %3062 = vmatmul.mubr.msk.f32.vlgmr.msra.gmra.mrb[24].mxu1 %vm620_vm11, %v1497_v43 }
 0x7cc   :  { %3077 = vmatprep.mubr.msk.f32.mxu1 %vm3366_vm0, %v3367_v4  ;;  %3201 = vmatpush3.bf16.msra.mxu1 %v3200_v52  ;;  %v3233_v44 = vpack.c.bf16 %v2212_v40, %v2208_v39  ;;  %v2218_v52 = vld [vmem:[%s4150_s16 + $0x60] sm:$0xff]  ;;  %v2399_v40 = vld [vmem:[%s4151_s17 + $0x30] sm:$0xff] }
 0x7cd   :  { %3202 = vmatprep.subr.bf16.mxu1 %v3365_v2 }
 0x7ce   :  { %v1575_v45 = vpop.f32.mrb[22].mxu1 }
 0x7cf   :  { %3051 = vmatmul.mubr.msk.f32.vlgmr.msra.gmra.mrb[16].mxu0 %vm620_vm11, %v1575_v45  ;;  %v3041_v46 = vpop.f32.mrb[23].mxu1 }
 0x7d0   :  { %3065 = vmatpush3.msra.mxu0 %v1426_v34  ;;  %3066 = vmatprep.mubr.msk.f32.mxu0 %vm3366_vm0, %v3367_v4  ;;  %v2215_v46 = vld [vmem:[%s4150_s16 + $0x48] sm:$0xff] }
 0x7d1   :  { %3080 = vmatprep.subr.mxu0 %v3367_v4  ;;  %3204 = vmatpush3.bf16.msra.mxu1 %v3203_v56  ;;  %v2220_v56 = vld [vmem:[%s4150_s16 + $0x70] sm:$0xff] }
 0x7d2   :  { %3211 = vmatprep.subr.bf16.mxu1 %v3365_v2  ;;  %v3237_v57 = vpack.c.bf16 %v2220_v56, %v2216_v55  ;;  %v2433_v56 = vld [vmem:[%s4151_s17 + $0x140] sm:$0xff] }
 0x7d3   :  { %3067 = vmatmul.mubr.msk.f32.vlgmr.msra.gmra.mrb[18].mxu0 %vm153_vm3, %v1729_v48  ;;  %v2219_v48 = vld [vmem:[%s4150_s16 + $0x68] sm:$0xff] }
 0x7d4   :  { %3081 = vmatpush3.msra.mxu0 %v1426_v34  ;;  %3082 = vmatprep.mubr.msk.f32.mxu0 %vm3366_vm0, %v3367_v4  ;;  %v2206_v34 = vld [vmem:[%s4150_s16] sm:$0xff]  ;;  %v3227_v50 = vpack.c.bf16 %v2219_v48, %v2215_v46  ;;  %v2418_v48 = vld [vmem:[%s4151_s17 + $0xc8] sm:$0xff] }
 0x7d5   :  { %3205 = vmatprep.subr.bf16.mxu0 %v3365_v2  ;;  %v3225_v37 = vpack.c.bf16 %v2210_v35, %v2206_v34  ;;  %v2415_v34 = vld [vmem:[%s4151_s17 + $0xb0] sm:$0xff]  ;;  %v2416_v35 = vld [vmem:[%s4151_s17 + $0xb8] sm:$0xff]  ;;  %v2417_v46 = vld [vmem:[%s4151_s17 + $0xc0] sm:$0xff] }
 0x7d7   :  { %3083 = vmatmul.mubr.msk.f32.vlgmr.msra.gmra.mrb[20].mxu0 %vm153_vm3, %v1881_v49  ;;  %v2217_v49 = vld [vmem:[%s4150_s16 + $0x58] sm:$0xff] }
 0x7d8   :  { %3093 = vmatprep.mubr.msk.f32.mxu0 %vm3366_vm0, %v3367_v4  ;;  %3207 = vmatpush3.bf16.msra.mxu0 %v3206_v58  ;;  %v3235_v53 = vpack.c.bf16 %v2221_v51, %v2217_v49  ;;  %v2409_v58 = vld [vmem:[%s4151_s17 + $0x80] sm:$0xff] }
 0x7d9   :  { %3208 = vmatprep.subr.bf16.mxu0 %v3365_v2  ;;  %v2449_v49 = vld [vmem:[%s4151_s17 + $0x1c0] sm:$0xff] }
 0x7dc   :  { %3210 = vmatpush3.bf16.msra.mxu0 %v3209_v61  ;;  %v3239_v61 = vpack.c.bf16 %v2410_v59, %v2409_v58  ;;  %v2419_v58 = vld [vmem:[%s4151_s17 + $0xd0] sm:$0xff]  ;;  %v2420_v59 = vld [vmem:[%s4151_s17 + $0xd8] sm:$0xff] }
 0x7dd   :  { %3217 = vmatprep.subr.bf16.mxu0 %v3365_v2 }
 0x89e   :  { %v1725_v62 = vpop.f32.mrb[24].mxu1 }
 0x89f   :  { %v3063_v63 = vpop.f32.mrb[25].mxu1 }
 0x8a2   :  { %v1652_v0 = vpop.f32.mrb[16].mxu0 }
 0x8a3   :  { %v1726_v1 = vadd.f32 %v1725_v62, %v1652_v0  ;;  %v3052_v3 = vpop.f32.mrb[17].mxu0  ;;  %v2442_v62 = vld [vmem:[%s4151_s17 + $0x188] sm:$0xff]  ;;  %v2688_v0 = vld [vmem:[%s4152_s18 + $0x7] ss:$0 sm:$0xff] }
 0x8a4   :  { %v3271_v63 = vpack.c.bf16 %v2442_v62, %v2441_v60  ;;  %v2394_v3 = vld [vmem:[%s4151_s17 + $0x8] sm:$0xff]  ;;  %v2451_v60 = vld [vmem:[%s4151_s17 + $0x1d0] sm:$0xff] }
 0x8a6   :  { %v1799_v5 = vpop.f32.mrb[18].mxu0 }
 0x8a7   :  { %3078 = vmatmul.mubr.msk.f32.vlgmr.msra.gmra.mrb[26].mxu1 %vm620_vm11, %v1799_v5  ;;  %v3068_v6 = vpop.f32.mrb[19].mxu0  ;;  %v2425_v5 = vld [vmem:[%s4151_s17 + $0x100] sm:$0xff] }
 0x8a8   :  { %3104 = vmatprep.mubr.msk.f32.mxu1 %vm3366_vm0, %v3367_v4  ;;  %3213 = vmatpush3.bf16.msra.mxu1 %v3212_v11  ;;  %v2426_v6 = vld [vmem:[%s4151_s17 + $0x108] sm:$0xff]  ;;  %v2444_v11 = vld [vmem:[%s4151_s17 + $0x198] sm:$0xff] }
 0x8a9   :  { %3214 = vmatprep.subr.bf16.mxu1 %v3365_v2  ;;  %v3273_v15 = vpack.c.bf16 %v2426_v6, %v2425_v5  ;;  %v2435_v6 = vld [vmem:[%s4151_s17 + $0x150] sm:$0xff] }
 0x8aa   :  { %v1951_v7 = vpop.f32.mrb[20].mxu0 }
 0x8ab   :  { %3094 = vmatmul.mubr.msk.f32.vlgmr.msra.gmra.mrb[22].mxu0 %vm620_vm11, %v1951_v7  ;;  %v3084_v8 = vpop.f32.mrb[21].mxu0  ;;  %v2411_v7 = vld [vmem:[%s4151_s17 + $0x90] sm:$0xff] }
 0x8ac   :  { %3115 = vmatprep.mubr.msk.f32.mxu0 %vm3366_vm0, %v3367_v4  ;;  %3216 = vmatpush3.bf16.msra.mxu1 %v3215_v14 }
 0x8ad   :  { %3219 = vmatpush3.bf16.msra.mxu0 %v3218_v17  ;;  %3224 = vmatprep.subr.bf16.mxu1 %v3223_v32  ;;  %v2396_v17 = vld [vmem:[%s4151_s17 + $0x18] sm:$0xff]  ;;  %v2429_v32 = vld [vmem:[%s4151_s17 + $0x120] sm:$0xff] }
 0x8ae   :  { %3220 = vmatprep.subr.bf16.mxu0 %v3365_v2  ;;  %v2125_v2 = vld [vmem:[%s4149_s15 + $0x10] sm:$0xff]  ;;  %v3281_v39 = vpack.c.bf16 %v2430_v33, %v2429_v32  ;;  %v2225_v33 = vshrl.u32 %v487_v47, 7 }
 0x8af   :  { %v3221_v28 = vpack.c.bf16 %v2126_v27, %v2125_v2  ;;  %v3245_v2 = vpack.c.bf16 %v2396_v17, %v2395_v16  ;;  %v2405_v16 = vld [vmem:[%s4151_s17 + $0x60] sm:$0xff]  ;;  %v2406_v17 = vld [vmem:[%s4151_s17 + $0x68] sm:$0xff] }
 0x8b1   :  { %3222 = vmatpush3.bf16.msra.mxu0 %v3221_v28  ;;  %v2397_v28 = vld [vmem:[%s4151_s17 + $0x20] sm:$0xff] }
 0x8b2   :  { %3232 = vmatprep.subr.bf16.mxu0 %v3231_v36  ;;  %v2447_v36 = vld [vmem:[%s4151_s17 + $0x1b0] sm:$0xff] }
 0x97a   :  { %v1876_v18 = vpop.f32.mrb[26].mxu1 }
 0x97b   :  { %v1880_v19 = vadd.f32 %v1876_v18, %v1726_v1  ;;  %v3079_v20 = vpop.f32.mrb[27].mxu1  ;;  %v2393_v1 = vld [vmem:[%s4151_s17] sm:$0xff] }
 0x97c   :  { %v3241_v14 = vpack.c.bf16 %v2394_v3, %v2393_v1  ;;  %v3275_v20 = vpack.c.bf16 %v2444_v11, %v2443_v10  ;;  %v2404_v1 = vld [vmem:[%s4151_s17 + $0x58] sm:$0xff]  ;;  %v3259_v3 = vpack.c.bf16 %v2420_v59, %v2419_v58  ;;  %v2453_v10 = vld [vmem:[%s4151_s17 + $0x1e0] sm:$0xff]  ;;  %v2454_v11 = vld [vmem:[%s4151_s17 + $0x1e8] sm:$0xff] }
 0x97e   :  { %v2028_v21 = vpop.f32.mrb[22].mxu0 }
 0x97f   :  { %v2032_v23 = vadd.f32 %v2028_v21, %v1880_v19  ;;  %v3095_v24 = vpop.f32.mrb[23].mxu0  ;;  %v3243_v19 = vpack.c.bf16 %v2412_v9, %v2411_v7  ;;  %v2427_v21 = vld [vmem:[%s4151_s17 + $0x110] sm:$0xff]  ;;  %v2436_v7 = vld [vmem:[%s4151_s17 + $0x158] sm:$0xff]  ;;  %v2422_v9 = vld [vmem:[%s4151_s17 + $0xe8] sm:$0xff] }
 0x980   :  { %v2414_v24 = vld [vmem:[%s4151_s17 + $0xa8] sm:$0xff] }
 0x981   :  { %v2038_v25 = vadd.f32 %v2685_v22, %v2032_v23  ;;  %v2428_v22 = vld [vmem:[%s4151_s17 + $0x118] sm:$0xff]  ;;  %v2413_v23 = vld [vmem:[%s4151_s17 + $0xa0] sm:$0xff] }
 0x982   :  { %v3277_v27 = vpack.c.bf16 %v2428_v22, %v2427_v21  ;;  %v3247_v30 = vpack.c.bf16 %v2414_v24, %v2413_v23  ;;  %v2423_v22 = vld [vmem:[%s4151_s17 + $0xf0] sm:$0xff]  ;;  %v2424_v23 = vld [vmem:[%s4151_s17 + $0xf8] sm:$0xff] }
 0x983   :  { %v2039_v26 = vmax.f32 %v2038_v25, 0.0  ;;  %v2445_v25 = vld [vmem:[%s4151_s17 + $0x1a0] sm:$0xff]  ;;  %v2455_v24 = vld [vmem:[%s4151_s17 + $0x1f0] sm:$0xff] }
 0x985   :  { %3105 = vmatmul.mubr.msk.f32.vlgmr.msra.gmra.mrb[28].mxu1 %vm620_vm11, %v2039_v26  ;;  %v2446_v26 = vld [vmem:[%s4151_s17 + $0x1a8] sm:$0xff] }
 0x986   :  { %2311 = vmatprep.mubr.f32.mxu1 %v3367_v4  ;;  %3226 = vmatpush1.bf16.msra.mxu1 %v3225_v37  ;;  %v3279_v31 = vpack.c.bf16 %v2446_v26, %v2445_v25  ;;  %v2448_v37 = vld [vmem:[%s4151_s17 + $0x1b8] sm:$0xff]  ;;  %v3267_v25 = vpack.c.bf16 %v2424_v23, %v2423_v22 }
 0x987   :  { %3228 = vmatprep.subr.bf16.mxu1 %v3227_v50  ;;  %v2450_v50 = vld [vmem:[%s4151_s17 + $0x1c8] sm:$0xff]  ;;  %v2456_v26 = vld [vmem:[%s4151_s17 + $0x1f8] sm:$0xff] }
 0x988   :  { %v3287_v55 = vpack.c.bf16 %v2450_v50, %v2449_v49 }
 0xa58   :  { %v2118_v41 = vpop.f32.mrb[28].mxu1 }
 0xa59   :  { %v2119_v42 = vadd.f32 %v2686_v38, %v2118_v41  ;;  %v3106_v43 = vpop.f32.mrb[29].mxu1  ;;  %v3249_v38 = vpack.c.bf16 %v2398_v29, %v2397_v28  ;;  %v2400_v41 = vld [vmem:[%s4151_s17 + $0x38] sm:$0xff]  ;;  %v3299_v28 = vpack.c.bf16 %v2456_v26, %v2455_v24 }
 0xa5a   :  { %v3283_v43 = vpack.c.bf16 %v2448_v37, %v2447_v36  ;;  %v3253_v51 = vpack.c.bf16 %v2400_v41, %v2399_v40  ;;  %v2222_v36 = vld [vmem:[%s4153_s19] sm:$0xf]  ;;  %v2230_v37 = vsub.s32 1, %v2225_v33 }
 0xa5b   :  { %v2122_v45 = vmax.f32 %v2119_v42, 0.0  ;;  %v3251_v42 = vpack.c.bf16 %v2416_v35, %v2415_v34  ;;  %v2226_v34 = vsub.s32 0, %v2225_v33  ;;  %v2234_v35 = vsub.s32 2, %v2225_v33 }
 0xa5c   :  { %v2231_v41 = vrot.slane %v2222_v36, %v2230_v37 }
 0xa5d   :  { %3116 = vmatmul.mubr.msk.f32.vlgmr.msra.gmra.mrb[24].mxu0 %vm620_vm11, %v2122_v45  ;;  %2607 = vst.msk [vmem:[#allocation4] sm:$0x3] %vm2606_vm12, %v2122_v45  ;;  %v2432_v45 = vld [vmem:[%s4151_s17 + $0x138] sm:$0xff]  ;;  %v2235_v40 = vrot.slane %v2222_v36, %v2234_v35 }
 0xa5e   :  { %3234 = vmatpush1.bf16.msra.mxu0 %v3233_v44  ;;  %2382 = vmatprep.mubr.f32.mxu0 %v3367_v4  ;;  %v2214_v4 = vld [vmem:[%s4150_s16 + $0x40] sm:$0xff]  ;;  %v2431_v44 = vld [vmem:[%s4151_s17 + $0x130] sm:$0xff] }
 0xa5f   :  { %v3229_v54 = vpack.c.bf16 %v2218_v52, %v2214_v4  ;;  %3236 = vmatprep.subr.bf16.mxu0 %v3235_v53  ;;  %v3285_v4 = vpack.c.bf16 %v2432_v45, %v2431_v44  ;;  %v2401_v52 = vld [vmem:[%s4151_s17 + $0x40] sm:$0xff]  ;;  %v2402_v53 = vld [vmem:[%s4151_s17 + $0x48] sm:$0xff] }
 0xa60   :  { %v3257_v62 = vpack.c.bf16 %v2402_v53, %v2401_v52 }
 0xa61   :  { %3230 = vmatpush1.bf16.msra.mxu1 %v3229_v54  ;;  %v3255_v54 = vpack.c.bf16 %v2418_v48, %v2417_v46 }
 0xa62   :  { %3238 = vmatpush1.bf16.msra.mxu0 %v3237_v57  ;;  %3240 = vmatprep.subr.bf16.mxu1 %v3239_v61  ;;  %v2434_v57 = vld [vmem:[%s4151_s17 + $0x148] sm:$0xff]  ;;  %v2452_v61 = vld [vmem:[%s4151_s17 + $0x1d8] sm:$0xff] }
 0xa63   :  { %3272 = vmatprep.subr.bf16.mxu0 %v3271_v63  ;;  %v3289_v63 = vpack.c.bf16 %v2434_v57, %v2433_v56  ;;  %v3291_v5 = vpack.c.bf16 %v2452_v61, %v2451_v60 }
 0xb30   :  { %v2201_v8 = vpop.f32.mrb[24].mxu0 }
 0xb31   :  { %v2202_v12 = vadd.f32 %v2688_v0, %v2201_v8  ;;  %v3117_v13 = vpop.f32.mrb[25].mxu0  ;;  %v2403_v0 = vld [vmem:[%s4151_s17 + $0x50] sm:$0xff]  ;;  %v2421_v8 = vld [vmem:[%s4151_s17 + $0xe0] sm:$0xff] }
 0xb32   :  { %v3293_v13 = vpack.c.bf16 %v2436_v7, %v2435_v6 }
 0xb33   :  { %v2205_v18 = vmax.f32 %v2202_v12, 0.0  ;;  %v3261_v12 = vpack.c.bf16 %v2404_v1, %v2403_v0 }
 0xb35   :  { %2690 = vmatmul.mubr.msk.f32.vlgmr.msra.gmra.mrb[30].mxu1 %vm620_vm11, %v2205_v18  ;;  %2691 = vmatmul.mubr.msk.f32.vlgmr.msra.gmra.mrb[26].mxu0 %vm620_vm11, %v2205_v18  ;;  %v2437_v18 = vld [vmem:[%s4151_s17 + $0x160] sm:$0xff] }
 0xb36   :  { %3242 = vmatpush3.bf16.msra.mxu1 %v3241_v14  ;;  %3274 = vmatpush3.bf16.msra.mxu0 %v3273_v15  ;;  %v3263_v14 = vpack.c.bf16 %v2422_v9, %v2421_v8  ;;  %v3295_v15 = vpack.c.bf16 %v2454_v11, %v2453_v10 }
 0xb37   :  { %3244 = vmatprep.subr.bf16.mxu1 %v3243_v19  ;;  %3276 = vmatprep.subr.bf16.mxu0 %v3275_v20  ;;  %v3265_v19 = vpack.c.bf16 %v2406_v17, %v2405_v16  ;;  %v2438_v20 = vld [vmem:[%s4151_s17 + $0x168] sm:$0xff] }
 0xb38   :  { %v3297_v21 = vpack.c.bf16 %v2438_v20, %v2437_v18 }
 0xb3a   :  { %3246 = vmatpush3.bf16.msra.mxu1 %v3245_v2  ;;  %3278 = vmatpush3.bf16.msra.mxu0 %v3277_v27  ;;  %v2407_v2 = vld [vmem:[%s4151_s17 + $0x70] sm:$0xff]  ;;  %v2408_v27 = vld [vmem:[%s4151_s17 + $0x78] sm:$0xff] }
 0xb3b   :  { %3248 = vmatprep.subr.bf16.mxu1 %v3247_v30  ;;  %3280 = vmatprep.subr.bf16.mxu0 %v3279_v31  ;;  %v3269_v29 = vpack.c.bf16 %v2408_v27, %v2407_v2  ;;  %v2439_v30 = vld [vmem:[%s4151_s17 + $0x170] sm:$0xff]  ;;  %v2440_v31 = vld [vmem:[%s4151_s17 + $0x178] sm:$0xff]  ;;  %s3369_s17 = smov [#allocation4]  }
 0xb3c   :  { %v3301_v32 = vpack.c.bf16 %v2440_v31, %v2439_v30  ;;  %s2624_s19 = sshll.u32 %s3369_s17, 4  ;;  %s2625_s19 = int_to_ptr.vmem [resolvable:$true] %s2624_s19 }
 0xb3d   :  { %s3317_s9 = scalar_lea.vmem %s2625_s19, 32  ;;  %p3322_p1 = scmp.lt.s32.totalorder %s2625_s19, %s2625_s19 }
 0xb3e   :  { %3250 = vmatpush3.bf16.msra.mxu1 %v3249_v38  ;;  %3282 = vmatpush3.bf16.msra.mxu0 %v3281_v39  ;;  %v2238_v38 = vsub.s32 3, %v2225_v33  ;;  %v2227_v39 = vrot.slane %v2222_v36, %v2226_v34  ;;  %p3318_p0 = scmp.ne.s32.totalorder %s2625_s19, %s3317_s9  ;;  %p3323_p2 = scmp.lt.s32.totalorder %s3317_s9, %s3317_s9 }
 0xb3f   :  { %3252 = vmatprep.subr.bf16.mxu1 %v3251_v42  ;;  %3284 = vmatprep.subr.bf16.mxu0 %v3283_v43 }
 0xb40   :  { %v2239_v42 = vrot.slane %v2222_v36, %v2238_v38  ;;  %p3324_p3 = por %p3323_p2, %p3322_p1 }
 0xb42   :  { %3254 = vmatpush3.bf16.msra.mxu1 %v3253_v51  ;;  %3286 = vmatpush3.bf16.msra.mxu0 %v3285_v4  ;;  %p3325_p4 = pnand %p3324_p3, %p3318_p0 }
 0xb43   :  { %3256 = vmatprep.subr.bf16.mxu1 %v3255_v54  ;;  %3288 = vmatprep.subr.bf16.mxu0 %v3287_v55 }
 0xb46   :  { %3258 = vmatpush3.bf16.msra.mxu1 %v3257_v62  ;;  %3290 = vmatpush3.bf16.msra.mxu0 %v3289_v63 }
 0xb47   :  { %3260 = vmatprep.subr.bf16.mxu1 %v3259_v3  ;;  %3292 = vmatprep.subr.bf16.mxu0 %v3291_v5 }
 0xb4a   :  { %3262 = vmatpush3.bf16.msra.mxu1 %v3261_v12  ;;  %3294 = vmatpush3.bf16.msra.mxu0 %v3293_v13 }
 0xb4b   :  { %3264 = vmatprep.subr.bf16.mxu1 %v3263_v14  ;;  %3296 = vmatprep.subr.bf16.mxu0 %v3295_v15 }
 0xb4e   :  { %3266 = vmatpush3.bf16.msra.mxu1 %v3265_v19  ;;  %3298 = vmatpush3.bf16.msra.mxu0 %v3297_v21 }
 0xb4f   :  { %3268 = vmatprep.subr.bf16.mxu1 %v3267_v25  ;;  %3300 = vmatprep.subr.bf16.mxu0 %v3299_v28 }
 0xb52   :  { %3270 = vmatpush3.bf16.msra.mxu1 %v3269_v29  ;;  %3302 = vmatpush3.bf16.msra.mxu0 %v3301_v32 }
 0xc08   :  { %v2313_v43 = vpop.f32.mrb[30].mxu1  ;;  %v2384_v44 = vpop.f32.mrb[26].mxu0 }
 0xc09   :  { %v2314_v45 = vadd.f32 %v2313_v43, %v2227_v39  ;;  %v2385_v46 = vadd.f32 %v2384_v44, %v2235_v40  ;;  %v2315_v48 = vpop.f32.mrb[31].mxu1  ;;  %v2386_v49 = vpop.f32.mrb[27].mxu0 }
 0xc0a   :  { %v2316_v50 = vadd.f32 %v2315_v48, %v2231_v41  ;;  %v2387_v47 = vadd.f32 %v2386_v49, %v2239_v42 }
 0xc0b   :  { %v2389_v52 = vmax.f32 %v2314_v45, 0.0  ;;  %v2391_v53 = vmax.f32 %v2385_v46, 0.0 }
 0xc0c   :  { %v2390_v51 = vmax.f32 %v2316_v50, 0.0  ;;  %v2392_v4 = vmax.f32 %v2387_v47, 0.0 }
 0xc0e   :  { %2528 = vmatprep.mubr.f32.mxu1 %v2390_v51  ;;  %2598 = vmatprep.mubr.f32.mxu0 %v2392_v4 }
 0xc0f   :  { %2529 = vmatmul.mubr.f32.vlgmr.msra.gmra.mrb[32].mxu1 %v2389_v52  ;;  %2599 = vmatmul.mubr.f32.vlgmr.msra.gmra.mrb[28].mxu0 %v2391_v53 }
 0xc10   :  { %3328 = shalt.err (!%p3325_p4)
}
 0xc11   :  { %s3329_s23 = scalar_lea.hbm %s4156_s22, 32 }
 0xc12   :  { %p3330_p5 = scmp.ne.s32.totalorder %s4156_s22, %s3329_s23  ;;  %p3333_p6 = scmp.lt.u32.totalorder %s3329_s23, %s4156_s22 }
 0xc14   :  { %p3335_p7 = pnand %p3333_p6, %p3330_p5 }
 0xc16   :  { %3338 = shalt.err (!%p3335_p7)
}
 0xc17   :  { %2627 = dma.vmem_to_hbm [thread:$0]  %s2625_s19, 32, %s4156_s22, [#allocation5]   ;;  %v2692_v56 = vld [vmem:[%s4154_s20] ss:$0 sm:$0xff]  ;;  %vm2604_vm13 = vcmask 123904  }
 0xc18   :  { %s3370_s2 = smov [#allocation2]  }
 0xc19   :  { %s2614_s25 = sshll.u32 %s3370_s2, 4  ;;  %s2615_s25 = int_to_ptr.vmem [resolvable:$true] %s2614_s25 }
 0xc1a   :  { %s3339_s3 = scalar_lea.vmem %s2615_s25, 32  ;;  %p3344_p9 = scmp.lt.s32.totalorder %s2615_s25, %s2615_s25 }
 0xc1b   :  { %p3340_p8 = scmp.ne.s32.totalorder %s2615_s25, %s3339_s3  ;;  %p3345_p10 = scmp.lt.s32.totalorder %s3339_s3, %s3339_s3 }
 0xc1d   :  { %p3346_p11 = por %p3345_p10, %p3344_p9 }
 0xc1f   :  { %p3347_p12 = pnand %p3346_p11, %p3340_p8 }
 0xce2   :  { %v2840_v54 = vpop.f32.mrb[32].mxu1  ;;  %v2875_v55 = vpop.f32.mrb[28].mxu0 }
 0xce3   :  { %v2841_v57 = vpop.f32.mrb[33].mxu1  ;;  %v2876_v58 = vpop.f32.mrb[29].mxu0 }
 0xce4   :  { %v2842_v59 = vadd.f32 %v2841_v57, %v2840_v54  ;;  %v2877_v60 = vadd.f32 %v2876_v58, %v2875_v55 }
 0xce6   :  { %v2531_v61 = vadd.f32 %v2842_v59, %v2692_v56 }
 0xce8   :  { %v2601_v62 = vadd.f32 %v2877_v60, %v2531_v61 }
 0xcea   :  { %2605 = vst.msk [vmem:[#allocation2] sm:$0x3] %vm2604_vm13, %v2601_v62 }
 0xceb   :  { %3350 = shalt.err (!%p3347_p12)
}
 0xcec   :  { %s3351_s10 = scalar_lea.hbm %s4155_s21, 32 }
 0xced   :  { %p3352_p13 = scmp.ne.s32.totalorder %s4155_s21, %s3351_s10  ;;  %p3355_p0 = scmp.lt.u32.totalorder %s3351_s10, %s4155_s21 }
 0xcef   :  { %p3357_p1 = pnand %p3355_p0, %p3352_p13 }
 0xcf1   :  { %3360 = shalt.err (!%p3357_p1)
}
 0xcf2   :  { %2617 = dma.vmem_to_hbm [thread:$0]  %s2615_s25, 32, %s4155_s21, [#allocation3]  }
 0xcf3   :  { %3361 = dma.done.wait [#allocation3], 32  }
 0xcf4   :  { %3362 = vsyncadd [#allocation3], 4294967264 }
 0xcf5   :  { %3363 = dma.done.wait [#allocation5], 32  }
 0xcf6   :  { %3364 = vsyncadd [#allocation5], 4294967264 }
 0xcf7   :  { %2634 = vsyncpa [#allocation3], 1 }
 0xcf8   :  { %2635 = vsyncpa [#allocation5], 1 }

</bundles_post_ra>
